<compile_context>
chip_gen: v6e
topology: v6e:2x2x1
jax: 0.10.0
libtpu: 0.0.40
codegen_flags: <defaults>
</compile_context>

<pallas_src>
import functools

import numpy as np
import jax
import jax.numpy as jnp
from jax.experimental import pallas as pl
from jax.experimental.pallas import tpu as pltpu

_LN_EPS = 1e-5
_VMEM_LIMIT = 64 * 1024 * 1024

_ROW_PARAMS = pltpu.CompilerParams(dimension_semantics=("parallel",),
                                   vmem_limit_bytes=_VMEM_LIMIT)
_ATTN_PARAMS = pltpu.CompilerParams(dimension_semantics=("parallel",),
                                    vmem_limit_bytes=_VMEM_LIMIT)


# ---------------------------------------------------------------- in-kernel math

def _layer_norm(z, g, b):
    mean = jnp.mean(z, axis=-1, keepdims=True)
    var = jnp.mean(jnp.square(z - mean), axis=-1, keepdims=True)
    return (z - mean) * jax.lax.rsqrt(var + _LN_EPS) * g + b


def _attn_tail(ctx, res, wf, bf, g1, be1, w1, b1, w2, b2, g2, be2):
    # linear_final + (dropout p=0) + residual + LayerNorm, then position-wise FFN
    # (Conv1d(k=1) == per-row linear) + residual + LayerNorm.
    y = jnp.dot(ctx, wf, preferred_element_type=jnp.float32) + bf
    a = _layer_norm(res + y, g1, be1)
    h = jnp.maximum(jnp.dot(a, w1, preferred_element_type=jnp.float32) + b1, 0.0)
    o = jnp.dot(h, w2, preferred_element_type=jnp.float32) + b2
    return _layer_norm(a + o, g2, be2)


def _qkv_split(x, wqkv, bqkv, q_ref, k_ref, v_ref):
    # Single fused (D, 3D) projection; slice the lane-concatenated result.
    y = jnp.dot(x, wqkv, preferred_element_type=jnp.float32) + bqkv
    dm = q_ref.shape[-1]
    q_ref[...] = y[:, :dm]
    k_ref[...] = y[:, dm:2 * dm]
    v_ref[...] = y[:, 2 * dm:]


# ---------------------------------------------------------------- kernels

def _pre_qkv_kernel(emb_ref, time_ref, pos_ref,
                    wsel_ref, bsel_ref, wt_ref, bt_ref, bemb_ref,
                    wqkv_ref, bqkv_ref,
                    x_ref, q_ref, k_ref, v_ref):
    # time_feature = time_layer(1 - tanh(selection_layer(t)^2)); selection_layer is
    # Linear(1, t0) so it is a broadcasted outer product.
    t = time_ref[...]                                        # (TR, 1)
    tsel = t * wsel_ref[...] + bsel_ref[...]                 # (TR, t0)
    tfeat = jnp.dot(1.0 - jnp.tanh(jnp.square(tsel)), wt_ref[...],
                    preferred_element_type=jnp.float32) + bt_ref[...]
    # output = sequence_embedding + bias_embedding; += time_feature; += positional
    x = emb_ref[...] + bemb_ref[...] + tfeat + pos_ref[...]
    x_ref[...] = x
    # fused QKV projection for layer 0
    _qkv_split(x, wqkv_ref[...], bqkv_ref[...], q_ref, k_ref, v_ref)


def _attention_kernel(q_ref, k_ref, v_ref, bias_ref, ctx_ref, *, scale):
    # one batch element per grid step, all H heads batched on the MXU.
    q = q_ref[0] * scale                    # fold scale into q (S*d mults, not S*S)
    k = k_ref[0]
    v = v_ref[0]
    s = jnp.einsum("hqd,hkd->hqk", q, k, preferred_element_type=jnp.float32)
    s = s + bias_ref[0][:, None, :]         # additive key-padding mask (0 / -inf)
    m = jnp.max(s, axis=-1, keepdims=True)
    e = jnp.exp(s - m)
    p = e / jnp.sum(e, axis=-1, keepdims=True)   # exact softmax (module semantics)
    # NOTE: the per-layer attention matrices are discarded by EncoderNew.forward,
    # so they are not written back to HBM (add an extra out_spec to expose them).
    ctx_ref[0] = jnp.einsum("hqk,hkd->hqd", p, v, preferred_element_type=jnp.float32)


def _tail_kernel(ctx_ref, res_ref, wf_ref, bf_ref, g1_ref, be1_ref,
                 w1_ref, b1_ref, w2_ref, b2_ref, g2_ref, be2_ref, o_ref):
    o_ref[...] = _attn_tail(ctx_ref[...], res_ref[...],
                            wf_ref[...], bf_ref[...], g1_ref[...], be1_ref[...],
                            w1_ref[...], b1_ref[...], w2_ref[...], b2_ref[...],
                            g2_ref[...], be2_ref[...])


def _tail_qkv_kernel(ctx_ref, res_ref, wf_ref, bf_ref, g1_ref, be1_ref,
                     w1_ref, b1_ref, w2_ref, b2_ref, g2_ref, be2_ref,
                     wqkv_ref, bqkv_ref,
                     o_ref, q_ref, k_ref, v_ref):
    out = _attn_tail(ctx_ref[...], res_ref[...],
                     wf_ref[...], bf_ref[...], g1_ref[...], be1_ref[...],
                     w1_ref[...], b1_ref[...], w2_ref[...], b2_ref[...],
                     g2_ref[...], be2_ref[...])
    o_ref[...] = out
    # fused QKV projection of the NEXT encoder layer (saves an HBM round trip).
    _qkv_split(out, wqkv_ref[...], bqkv_ref[...], q_ref, k_ref, v_ref)


# ---------------------------------------------------------------- spec helpers

def _row_spec(tile, feat):
    return pl.BlockSpec((tile, feat), lambda i: (i, 0))


def _const_spec(arr):
    nd = arr.ndim
    return pl.BlockSpec(arr.shape, lambda i, _nd=nd: (0,) * _nd)


def _pick_row_tile(rows, target=256):
    """Largest 8-aligned divisor of `rows` that is <= target (else one full block)."""
    if rows <= target:
        return rows
    for t in range(target, 7, -1):
        if rows % t == 0 and t % 8 == 0:
            return t
    return rows


# ---------------------------------------------------------------- forward pass

def encoder_new(sequence_embedding, seq_time_step, lengths, params, *, num_heads):
    """EncoderNew.forward (mask_mult / device args of the PyTorch forward are unused)."""
    B, S, D = sequence_embedding.shape
    H = num_heads
    d = D // H
    rows = B * S
    tr = _pick_row_tile(rows)
    grid_rows = (rows // tr,)
    # PyTorch quirk: scale = (dim_per_head // num_heads) ** (-0.5)  (integer division!)
    scale = float((d // H) ** (-0.5))

    layers = params["layers"]
    f32 = jnp.float32
    row_out = jax.ShapeDtypeStruct((rows, D), f32)

    # ---- host/XLA-side setup (mirrors PositionalEncoding.forward + padding_mask) ----
    ar = jnp.arange(S, dtype=jnp.int32)
    pos_ids = jnp.where(ar[None, :] < lengths[:, None].astype(jnp.int32),
                        ar[None, :] + 1, 0)                            # (B, S)
    pos_emb = jnp.take(params["pos_table"], pos_ids, axis=0)           # (B, S, D)
    neg = jnp.where(pos_ids == 0, -jnp.inf, 0.0).astype(f32)           # key-padding bias
    # torch: attn_mask.repeat(H,1,1) -> mask row used for view-batch j is mask[j % B]
    # (quirk of the original module, reproduced faithfully).
    mask_bias = jnp.tile(neg, (H, 1)).reshape(B, H, S)

    emb_rows = sequence_embedding.reshape(rows, D)
    time_rows = seq_time_step.reshape(rows, 1)
    pos_rows = pos_emb.reshape(rows, D)

    # ---- fused: time feature + bias + positional add + layer-0 QKV projection ----
    pre_consts = (params["wsel"], params["bsel"], params["wt"], params["bt"],
                  params["bias_emb"], layers[0]["wqkv"], layers[0]["bqkv"])
    x_rows, q_rows, k_rows, v_rows = pl.pallas_call(
        _pre_qkv_kernel,
        grid=grid_rows,
        in_specs=[_row_spec(tr, D), _row_spec(tr, 1), _row_spec(tr, D)]
                 + [_const_spec(a) for a in pre_consts],
        out_specs=[_row_spec(tr, D)] * 4,
        out_shape=[row_out] * 4,
        compiler_params=_ROW_PARAMS,
    )(emb_rows, time_rows, pos_rows, *pre_consts)

    for li, lp in enumerate(layers):
        # raw torch .view(B*H, -1, d) reinterpretation (seq/head interleave):
        # metadata-only reshape of the row-major buffers between calls.
        q4 = q_rows.reshape(B, H, S, d)
        k4 = k_rows.reshape(B, H, S, d)
        v4 = v_rows.reshape(B, H, S, d)

        ctx4 = pl.pallas_call(
            functools.partial(_attention_kernel, scale=scale),
            grid=(B,),
            in_specs=[pl.BlockSpec((1, H, S, d), lambda b: (b, 0, 0, 0)),
                      pl.BlockSpec((1, H, S, d), lambda b: (b, 0, 0, 0)),
                      pl.BlockSpec((1, H, S, d), lambda b: (b, 0, 0, 0)),
                      pl.BlockSpec((1, H, S), lambda b: (b, 0, 0))],
            out_specs=pl.BlockSpec((1, H, S, d), lambda b: (b, 0, 0, 0)),
            out_shape=jax.ShapeDtypeStruct((B, H, S, d), f32),
            compiler_params=_ATTN_PARAMS,
        )(q4, k4, v4, mask_bias)

        ctx_rows = ctx4.reshape(rows, D)        # torch context.view(B, -1, H*d)

        tail_w = (lp["wf"], lp["bf"], lp["g1"], lp["be1"],
                  lp["w1"], lp["b1"], lp["w2"], lp["b2"], lp["g2"], lp["be2"])

        if li + 1 < len(layers):
            nxt = layers[li + 1]
            consts = tail_w + (nxt["wqkv"], nxt["bqkv"])
            x_rows, q_rows, k_rows, v_rows = pl.pallas_call(
                _tail_qkv_kernel,
                grid=grid_rows,
                in_specs=[_row_spec(tr, D), _row_spec(tr, D)]
                         + [_const_spec(a) for a in consts],
                out_specs=[_row_spec(tr, D)] * 4,
                out_shape=[row_out] * 4,
                compiler_params=_ROW_PARAMS,
            )(ctx_rows, x_rows, *consts)
        else:
            x_rows = pl.pallas_call(
                _tail_kernel,
                grid=grid_rows,
                in_specs=[_row_spec(tr, D), _row_spec(tr, D)]
                         + [_const_spec(a) for a in tail_w],
                out_specs=_row_spec(tr, D),
                out_shape=row_out,
                compiler_params=_ROW_PARAMS,
            )(ctx_rows, x_rows, *tail_w)

    return x_rows.reshape(B, S, D)


# ---------------------------------------------------------------- pure-JAX reference

def _reference(sequence_embedding, seq_time_step, lengths, params, num_heads):
    B, S, D = sequence_embedding.shape
    H = num_heads
    d = D // H
    scale = float((d // H) ** (-0.5))

    def ln(z, g, b):
        m = z.mean(-1, keepdims=True)
        v = ((z - m) ** 2).mean(-1, keepdims=True)
        return (z - m) / jnp.sqrt(v + _LN_EPS) * g + b

    tsel = seq_time_step @ params["wsel"] + params["bsel"]
    tfeat = (1.0 - jnp.tanh(jnp.square(tsel))) @ params["wt"] + params["bt"]
    out = sequence_embedding + params["bias_emb"]
    out = out + tfeat
    ar = jnp.arange(S, dtype=jnp.int32)
    pos_ids = jnp.where(ar[None, :] < lengths[:, None].astype(jnp.int32),
                        ar[None, :] + 1, 0)
    out = out + params["pos_table"][pos_ids]
    neg = jnp.where(pos_ids == 0, -jnp.inf, 0.0).astype(jnp.float32)
    bias_rep = jnp.tile(neg, (H, 1))                     # (B*H, S): row j -> mask[j % B]

    for lp in params["layers"]:
        x = out
        qkv = x @ lp["wqkv"] + lp["bqkv"]
        q, k, v = qkv[..., :D], qkv[..., D:2 * D], qkv[..., 2 * D:]
        qh = q.reshape(B * H, S, d)
        kh = k.reshape(B * H, S, d)
        vh = v.reshape(B * H, S, d)
        s = jnp.einsum("bqd,bkd->bqk", qh, kh) * scale + bias_rep[:, None, :]
        attn = jax.nn.softmax(s, axis=-1)
        ctx = jnp.einsum("bqk,bkd->bqd", attn, vh).reshape(B, S, D)
        a = ln(x + ctx @ lp["wf"] + lp["bf"], lp["g1"], lp["be1"])
        h = jax.nn.relu(a @ lp["w1"] + lp["b1"])
        out = ln(a + h @ lp["w2"] + lp["b2"], lp["g2"], lp["be2"])
    return out


# ---------------------------------------------------------------- main

if __name__ == "__main__":
    B, S, D, H, F = 2, 8, 32, 4, 64      # batch, max_seq_len, hita_input_size, heads, ffn
    T0 = 16                              # hita_time_selection_layer_encoder[0]
    L = 2                                # args.hita_encoder_layer

    key = jax.random.PRNGKey(0)
    ks = jax.random.split(key, 8 + L)

    def w(k_, shape, s=0.05):
        return jax.random.normal(k_, shape, jnp.float32) * s

    # PositionalEncoding table (row 0 = padding row), exactly as in the PyTorch module.
    jj = np.arange(D)
    angles = np.arange(S)[:, None] / np.power(10000.0, 2.0 * (jj // 2) / D)[None, :]
    pe = np.array(angles)
    pe[:, 0::2] = np.sin(angles[:, 0::2])
    pe[:, 1::2] = np.cos(angles[:, 1::2])
    pos_table = jnp.asarray(np.concatenate([np.zeros((1, D)), pe], axis=0),
                            dtype=jnp.float32)

    layers = []
    for li in range(L):
        kk = jax.random.split(ks[8 + li], 8)
        layers.append(dict(
            wqkv=w(kk[0], (D, 3 * D)), bqkv=w(kk[1], (1, 3 * D)),
            wf=w(kk[2], (D, D)), bf=w(kk[3], (1, D)),
            g1=jnp.ones((1, D), jnp.float32), be1=jnp.zeros((1, D), jnp.float32),
            w1=w(kk[4], (D, F)), b1=w(kk[5], (1, F)),
            w2=w(kk[6], (F, D)), b2=w(kk[7], (1, D)),
            g2=jnp.ones((1, D), jnp.float32), be2=jnp.zeros((1, D), jnp.float32),
        ))

    params = dict(
        wsel=w(ks[1], (1, T0)), bsel=w(ks[2], (1, T0)),
        wt=w(ks[3], (T0, D)), bt=w(ks[4], (1, D)),
        bias_emb=w(ks[5], (1, D)),
        pos_table=pos_table,
        layers=layers,
    )

    sequence_embedding = jax.random.normal(ks[6], (B, S, D), jnp.float32)
    seq_time_step = jax.random.uniform(ks[7], (B, S, 1), jnp.float32) * 2.0
    lengths = jnp.array([S, 5], dtype=jnp.int32)
    # mask_mult / device args of the PyTorch forward are unused there and omitted.

    run = jax.jit(functools.partial(encoder_new, num_heads=H))
    out = run(sequence_embedding, seq_time_step, lengths, params)
    out = jax.block_until_ready(out)

    with jax.default_matmul_precision("highest"):
        ref = _reference(sequence_embedding, seq_time_step, lengths, params, H)
        ref = jax.block_until_ready(ref)

    assert out.shape == (B, S, D)
    assert jnp.allclose(out, ref, atol=1e-4, rtol=1e-4), \
        float(jnp.max(jnp.abs(out - ref)))

    print("KERNEL_OK")
</pallas_src>

<mosaic_0001>
module attributes {stable_mosaic.version = 11 : i64} {
  func.func @_attention_kernel(%arg0: i32, %arg1: memref<1x4x8x8xf32, #tpu.memory_space<vmem>>, %arg2: memref<1x4x8x8xf32, #tpu.memory_space<vmem>>, %arg3: memref<1x4x8x8xf32, #tpu.memory_space<vmem>>, %arg4: memref<1x4x8xf32, #tpu.memory_space<vmem>>, %arg5: memref<1x4x8x8xf32, #tpu.memory_space<vmem>>) attributes {dimension_semantics = [#tpu.dimension_semantics<parallel>], iteration_bounds = array<i64: 2>, scalar_prefetch = 0 : i64, scratch_operands = 0 : i64, tpu.core_type = #tpu.core_type<tc>, window_params = [{transform_indices = @transform_0, window_bounds = array<i64: 1, 4, 8, 8>}, {transform_indices = @transform_1, window_bounds = array<i64: 1, 4, 8, 8>}, {transform_indices = @transform_2, window_bounds = array<i64: 1, 4, 8, 8>}, {transform_indices = @transform_3, window_bounds = array<i64: 1, 4, 8>}, {transform_indices = @transform_4, window_bounds = array<i64: 1, 4, 8, 8>}]} {
    %c0 = arith.constant 0 : index
    %c0_0 = arith.constant 0 : index
    %c0_1 = arith.constant 0 : index
    %c0_2 = arith.constant 0 : index
    %0 = vector.load %arg1[%c0, %c0_0, %c0_1, %c0_2] : memref<1x4x8x8xf32, #tpu.memory_space<vmem>>, vector<1x4x8x8xf32>
    %1 = vector.shape_cast %0 : vector<1x4x8x8xf32> to vector<4x8x8xf32>
    %cst = arith.constant 0.707106769 : f32
    %2 = vector.broadcast %cst : f32 to vector<4x8x8xf32>
    %3 = arith.mulf %1, %2 : vector<4x8x8xf32>
    %c0_3 = arith.constant 0 : index
    %c0_4 = arith.constant 0 : index
    %c0_5 = arith.constant 0 : index
    %c0_6 = arith.constant 0 : index
    %4 = vector.load %arg2[%c0_3, %c0_4, %c0_5, %c0_6] : memref<1x4x8x8xf32, #tpu.memory_space<vmem>>, vector<1x4x8x8xf32>
    %5 = vector.shape_cast %4 : vector<1x4x8x8xf32> to vector<4x8x8xf32>
    %c0_7 = arith.constant 0 : index
    %c0_8 = arith.constant 0 : index
    %c0_9 = arith.constant 0 : index
    %c0_10 = arith.constant 0 : index
    %6 = vector.load %arg3[%c0_7, %c0_8, %c0_9, %c0_10] : memref<1x4x8x8xf32, #tpu.memory_space<vmem>>, vector<1x4x8x8xf32>
    %7 = vector.shape_cast %6 : vector<1x4x8x8xf32> to vector<4x8x8xf32>
    "tpu.trace_start"() <{level = 10 : i32, message = "hqd,hkd->hqk"}> : () -> ()
    %cst_11 = arith.constant dense<0.000000e+00> : vector<4x8x8xf32>
    %8 = tpu.matmul %3, %5, %cst_11 {dimension_numbers = #tpu.dot_dimension_numbers<[2], [2], [1], [1], [0, 0, 0, 1, 1, 1], [0], [0]>} : vector<4x8x8xf32>, vector<4x8x8xf32>, vector<4x8x8xf32> -> vector<4x8x8xf32>
    "tpu.trace_stop"() : () -> ()
    %c0_12 = arith.constant 0 : index
    %c0_13 = arith.constant 0 : index
    %c0_14 = arith.constant 0 : index
    %9 = vector.load %arg4[%c0_12, %c0_13, %c0_14] : memref<1x4x8xf32, #tpu.memory_space<vmem>>, vector<1x4x8xf32>
    %10 = vector.shape_cast %9 : vector<1x4x8xf32> to vector<4x8xf32>
    %11 = vector.shape_cast %10 : vector<4x8xf32> to vector<4x1x8xf32>
    %12 = vector.broadcast %11 : vector<4x1x8xf32> to vector<4x8x8xf32>
    %13 = arith.addf %8, %12 : vector<4x8x8xf32>
    %cst_15 = arith.constant dense<0xFF800000> : vector<4x8xf32>
    %14 = vector.multi_reduction <maximumf>, %13, %cst_15 [2] : vector<4x8x8xf32> to vector<4x8xf32>
    %15 = vector.shape_cast %14 : vector<4x8xf32> to vector<4x8x1xf32>
    %16 = vector.broadcast %15 : vector<4x8x1xf32> to vector<4x8x8xf32>
    %17 = arith.subf %13, %16 : vector<4x8x8xf32>
    %18 = math.exp %17 : vector<4x8x8xf32>
    %cst_16 = arith.constant dense<0.000000e+00> : vector<4x8xf32>
    %19 = vector.multi_reduction <add>, %18, %cst_16 [2] : vector<4x8x8xf32> to vector<4x8xf32>
    %20 = vector.shape_cast %19 : vector<4x8xf32> to vector<4x8x1xf32>
    %21 = vector.broadcast %20 : vector<4x8x1xf32> to vector<4x8x8xf32>
    %22 = arith.divf %18, %21 : vector<4x8x8xf32>
    "tpu.trace_start"() <{level = 10 : i32, message = "hqk,hkd->hqd"}> : () -> ()
    %cst_17 = arith.constant dense<0.000000e+00> : vector<4x8x8xf32>
    %23 = tpu.matmul %22, %7, %cst_17 {dimension_numbers = #tpu.dot_dimension_numbers<[2], [1], [1], [2], [0, 0, 0, 1, 1, 2], [0], [0]>} : vector<4x8x8xf32>, vector<4x8x8xf32>, vector<4x8x8xf32> -> vector<4x8x8xf32>
    "tpu.trace_stop"() : () -> ()
    %c0_18 = arith.constant 0 : index
    %c0_19 = arith.constant 0 : index
    %c0_20 = arith.constant 0 : index
    %c0_21 = arith.constant 0 : index
    %24 = vector.load %arg5[%c0_18, %c0_19, %c0_20, %c0_21] : memref<1x4x8x8xf32, #tpu.memory_space<vmem>>, vector<1x4x8x8xf32>
    %25 = vector.shape_cast %24 : vector<1x4x8x8xf32> to vector<4x8x8xf32>
    %26 = vector.shape_cast %23 : vector<4x8x8xf32> to vector<1x4x8x8xf32>
    tpu.vector_store %arg5[%c0_18, %c0_19, %c0_20, %c0_21], %26 {strides = array<i32>} : memref<1x4x8x8xf32, #tpu.memory_space<vmem>>, vector<1x4x8x8xf32>,
    return
  }
  func.func @transform_0(%arg0: i32) -> (i32, i32, i32, i32) {
    %c0_i32 = arith.constant 0 : i32
    %c0_i32_0 = arith.constant 0 : i32
    %c0_i32_1 = arith.constant 0 : i32
    %c0_i32_2 = arith.constant 0 : i32
    return %arg0, %c0_i32, %c0_i32_0, %c0_i32_1 : i32, i32, i32, i32
  }
  func.func @transform_1(%arg0: i32) -> (i32, i32, i32, i32) {
    %c0_i32 = arith.constant 0 : i32
    %c0_i32_0 = arith.constant 0 : i32
    %c0_i32_1 = arith.constant 0 : i32
    %c0_i32_2 = arith.constant 0 : i32
    return %arg0, %c0_i32, %c0_i32_0, %c0_i32_1 : i32, i32, i32, i32
  }
  func.func @transform_2(%arg0: i32) -> (i32, i32, i32, i32) {
    %c0_i32 = arith.constant 0 : i32
    %c0_i32_0 = arith.constant 0 : i32
    %c0_i32_1 = arith.constant 0 : i32
    %c0_i32_2 = arith.constant 0 : i32
    return %arg0, %c0_i32, %c0_i32_0, %c0_i32_1 : i32, i32, i32, i32
  }
  func.func @transform_3(%arg0: i32) -> (i32, i32, i32) {
    %c0_i32 = arith.constant 0 : i32
    %c0_i32_0 = arith.constant 0 : i32
    %c0_i32_1 = arith.constant 0 : i32
    return %arg0, %c0_i32, %c0_i32_0 : i32, i32, i32
  }
  func.func @transform_4(%arg0: i32) -> (i32, i32, i32, i32) {
    %c0_i32 = arith.constant 0 : i32
    %c0_i32_0 = arith.constant 0 : i32
    %c0_i32_1 = arith.constant 0 : i32
    %c0_i32_2 = arith.constant 0 : i32
    return %arg0, %c0_i32, %c0_i32_0, %c0_i32_1 : i32, i32, i32, i32
  }
}

module attributes {stable_mosaic.version = 11 : i64} {
  func.func @_pre_qkv_kernel(%arg0: i32, %arg1: memref<16x32xf32, #tpu.memory_space<vmem>>, %arg2: memref<16x1xf32, #tpu.memory_space<vmem>>, %arg3: memref<16x32xf32, #tpu.memory_space<vmem>>, %arg4: memref<1x16xf32, #tpu.memory_space<vmem>>, %arg5: memref<1x16xf32, #tpu.memory_space<vmem>>, %arg6: memref<16x32xf32, #tpu.memory_space<vmem>>, %arg7: memref<1x32xf32, #tpu.memory_space<vmem>>, %arg8: memref<1x32xf32, #tpu.memory_space<vmem>>, %arg9: memref<32x96xf32, #tpu.memory_space<vmem>>, %arg10: memref<1x96xf32, #tpu.memory_space<vmem>>, %arg11: memref<16x32xf32, #tpu.memory_space<vmem>>, %arg12: memref<16x32xf32, #tpu.memory_space<vmem>>, %arg13: memref<16x32xf32, #tpu.memory_space<vmem>>, %arg14: memref<16x32xf32, #tpu.memory_space<vmem>>) attributes {dimension_semantics = [#tpu.dimension_semantics<parallel>], iteration_bounds = array<i64: 1>, scalar_prefetch = 0 : i64, scratch_operands = 0 : i64, tpu.core_type = #tpu.core_type<tc>, window_params = [{transform_indices = @transform_0, window_bounds = array<i64: 16, 32>}, {transform_indices = @transform_1, window_bounds = array<i64: 16, 1>}, {transform_indices = @transform_2, window_bounds = array<i64: 16, 32>}, {pipeline_mode = #tpu.pipeline_mode<synchronous>, transform_indices = @transform_3, window_bounds = array<i64: 1, 16>}, {pipeline_mode = #tpu.pipeline_mode<synchronous>, transform_indices = @transform_4, window_bounds = array<i64: 1, 16>}, {pipeline_mode = #tpu.pipeline_mode<synchronous>, transform_indices = @transform_5, window_bounds = array<i64: 16, 32>}, {pipeline_mode = #tpu.pipeline_mode<synchronous>, transform_indices = @transform_6, window_bounds = array<i64: 1, 32>}, {pipeline_mode = #tpu.pipeline_mode<synchronous>, transform_indices = @transform_7, window_bounds = array<i64: 1, 32>}, {pipeline_mode = #tpu.pipeline_mode<synchronous>, transform_indices = @transform_8, window_bounds = array<i64: 32, 96>}, {pipeline_mode = #tpu.pipeline_mode<synchronous>, transform_indices = @transform_9, window_bounds = array<i64: 1, 96>}, {transform_indices = @transform_10, window_bounds = array<i64: 16, 32>}, {transform_indices = @transform_11, window_bounds = array<i64: 16, 32>}, {transform_indices = @transform_12, window_bounds = array<i64: 16, 32>}, {transform_indices = @transform_13, window_bounds = array<i64: 16, 32>}]} {
    %c0 = arith.constant 0 : index
    %c0_0 = arith.constant 0 : index
    %0 = vector.load %arg2[%c0, %c0_0] : memref<16x1xf32, #tpu.memory_space<vmem>>, vector<16x1xf32>
    %c0_1 = arith.constant 0 : index
    %c0_2 = arith.constant 0 : index
    %1 = vector.load %arg4[%c0_1, %c0_2] : memref<1x16xf32, #tpu.memory_space<vmem>>, vector<1x16xf32>
    %2 = vector.broadcast %0 : vector<16x1xf32> to vector<16x16xf32>
    %3 = vector.broadcast %1 : vector<1x16xf32> to vector<16x16xf32>
    %4 = arith.mulf %2, %3 : vector<16x16xf32>
    %c0_3 = arith.constant 0 : index
    %c0_4 = arith.constant 0 : index
    %5 = vector.load %arg5[%c0_3, %c0_4] : memref<1x16xf32, #tpu.memory_space<vmem>>, vector<1x16xf32>
    %6 = vector.broadcast %5 : vector<1x16xf32> to vector<16x16xf32>
    %7 = arith.addf %4, %6 : vector<16x16xf32>
    %8 = arith.mulf %7, %7 : vector<16x16xf32>
    %9 = math.tanh %8 : vector<16x16xf32>
    %cst = arith.constant 1.000000e+00 : f32
    %10 = vector.broadcast %cst : f32 to vector<16x16xf32>
    %11 = arith.subf %10, %9 : vector<16x16xf32>
    %c0_5 = arith.constant 0 : index
    %c0_6 = arith.constant 0 : index
    %12 = vector.load %arg6[%c0_5, %c0_6] : memref<16x32xf32, #tpu.memory_space<vmem>>, vector<16x32xf32>
    %cst_7 = arith.constant dense<0.000000e+00> : vector<16x32xf32>
    %13 = tpu.matmul %11, %12, %cst_7 {dimension_numbers = #tpu.dot_dimension_numbers<[1], [0], [0], [1], [0, 0, 1, 1], [], []>} : vector<16x16xf32>, vector<16x32xf32>, vector<16x32xf32> -> vector<16x32xf32>
    %c0_8 = arith.constant 0 : index
    %c0_9 = arith.constant 0 : index
    %14 = vector.load %arg7[%c0_8, %c0_9] : memref<1x32xf32, #tpu.memory_space<vmem>>, vector<1x32xf32>
    %15 = vector.broadcast %14 : vector<1x32xf32> to vector<16x32xf32>
    %16 = arith.addf %13, %15 : vector<16x32xf32>
    %c0_10 = arith.constant 0 : index
    %c0_11 = arith.constant 0 : index
    %17 = vector.load %arg1[%c0_10, %c0_11] : memref<16x32xf32, #tpu.memory_space<vmem>>, vector<16x32xf32>
    %c0_12 = arith.constant 0 : index
    %c0_13 = arith.constant 0 : index
    %18 = vector.load %arg8[%c0_12, %c0_13] : memref<1x32xf32, #tpu.memory_space<vmem>>, vector<1x32xf32>
    %19 = vector.broadcast %18 : vector<1x32xf32> to vector<16x32xf32>
    %20 = arith.addf %17, %19 : vector<16x32xf32>
    %21 = arith.addf %20, %16 : vector<16x32xf32>
    %c0_14 = arith.constant 0 : index
    %c0_15 = arith.constant 0 : index
    %22 = vector.load %arg3[%c0_14, %c0_15] : memref<16x32xf32, #tpu.memory_space<vmem>>, vector<16x32xf32>
    %23 = arith.addf %21, %22 : vector<16x32xf32>
    %c0_16 = arith.constant 0 : index
    %c0_17 = arith.constant 0 : index
    %24 = vector.load %arg11[%c0_16, %c0_17] : memref<16x32xf32, #tpu.memory_space<vmem>>, vector<16x32xf32>
    tpu.vector_store %arg11[%c0_16, %c0_17], %23 {strides = array<i32>} : memref<16x32xf32, #tpu.memory_space<vmem>>, vector<16x32xf32>,
    %c0_18 = arith.constant 0 : index
    %c0_19 = arith.constant 0 : index
    %25 = vector.load %arg9[%c0_18, %c0_19] : memref<32x96xf32, #tpu.memory_space<vmem>>, vector<32x96xf32>
    %c0_20 = arith.constant 0 : index
    %c0_21 = arith.constant 0 : index
    %26 = vector.load %arg10[%c0_20, %c0_21] : memref<1x96xf32, #tpu.memory_space<vmem>>, vector<1x96xf32>
    %cst_22 = arith.constant dense<0.000000e+00> : vector<16x96xf32>
    %27 = tpu.matmul %23, %25, %cst_22 {dimension_numbers = #tpu.dot_dimension_numbers<[1], [0], [0], [1], [0, 0, 1, 1], [], []>} : vector<16x32xf32>, vector<32x96xf32>, vector<16x96xf32> -> vector<16x96xf32>
    %28 = vector.broadcast %26 : vector<1x96xf32> to vector<16x96xf32>
    %29 = arith.addf %27, %28 : vector<16x96xf32>
    %30 = vector.extract_strided_slice %29 {offsets = [0, 0], sizes = [16, 32], strides = [1, 1]} : vector<16x96xf32> to vector<16x32xf32>
    %c0_23 = arith.constant 0 : index
    %c0_24 = arith.constant 0 : index
    %31 = vector.load %arg12[%c0_23, %c0_24] : memref<16x32xf32, #tpu.memory_space<vmem>>, vector<16x32xf32>
    tpu.vector_store %arg12[%c0_23, %c0_24], %30 {strides = array<i32>} : memref<16x32xf32, #tpu.memory_space<vmem>>, vector<16x32xf32>,
    %32 = vector.extract_strided_slice %29 {offsets = [0, 32], sizes = [16, 32], strides = [1, 1]} : vector<16x96xf32> to vector<16x32xf32>
    %c0_25 = arith.constant 0 : index
    %c0_26 = arith.constant 0 : index
    %33 = vector.load %arg13[%c0_25, %c0_26] : memref<16x32xf32, #tpu.memory_space<vmem>>, vector<16x32xf32>
    tpu.vector_store %arg13[%c0_25, %c0_26], %32 {strides = array<i32>} : memref<16x32xf32, #tpu.memory_space<vmem>>, vector<16x32xf32>,
    %34 = vector.extract_strided_slice %29 {offsets = [0, 64], sizes = [16, 32], strides = [1, 1]} : vector<16x96xf32> to vector<16x32xf32>
    %c0_27 = arith.constant 0 : index
    %c0_28 = arith.constant 0 : index
    %35 = vector.load %arg14[%c0_27, %c0_28] : memref<16x32xf32, #tpu.memory_space<vmem>>, vector<16x32xf32>
    tpu.vector_store %arg14[%c0_27, %c0_28], %34 {strides = array<i32>} : memref<16x32xf32, #tpu.memory_space<vmem>>, vector<16x32xf32>,
    return
  }
  func.func @transform_0(%arg0: i32) -> (i32, i32) {
    %c0_i32 = arith.constant 0 : i32
    %c0_i32_0 = arith.constant 0 : i32
    return %arg0, %c0_i32 : i32, i32
  }
  func.func @transform_1(%arg0: i32) -> (i32, i32) {
    %c0_i32 = arith.constant 0 : i32
    %c0_i32_0 = arith.constant 0 : i32
    return %arg0, %c0_i32 : i32, i32
  }
  func.func @transform_2(%arg0: i32) -> (i32, i32) {
    %c0_i32 = arith.constant 0 : i32
    %c0_i32_0 = arith.constant 0 : i32
    return %arg0, %c0_i32 : i32, i32
  }
  func.func @transform_3(%arg0: i32) -> (i32, i32) {
    %c0_i32 = arith.constant 0 : i32
    %c0_i32_0 = arith.constant 0 : i32
    %c0_i32_1 = arith.constant 0 : i32
    return %c0_i32, %c0_i32_0 : i32, i32
  }
  func.func @transform_4(%arg0: i32) -> (i32, i32) {
    %c0_i32 = arith.constant 0 : i32
    %c0_i32_0 = arith.constant 0 : i32
    %c0_i32_1 = arith.constant 0 : i32
    return %c0_i32, %c0_i32_0 : i32, i32
  }
  func.func @transform_5(%arg0: i32) -> (i32, i32) {
    %c0_i32 = arith.constant 0 : i32
    %c0_i32_0 = arith.constant 0 : i32
    %c0_i32_1 = arith.constant 0 : i32
    return %c0_i32, %c0_i32_0 : i32, i32
  }
  func.func @transform_6(%arg0: i32) -> (i32, i32) {
    %c0_i32 = arith.constant 0 : i32
    %c0_i32_0 = arith.constant 0 : i32
    %c0_i32_1 = arith.constant 0 : i32
    return %c0_i32, %c0_i32_0 : i32, i32
  }
  func.func @transform_7(%arg0: i32) -> (i32, i32) {
    %c0_i32 = arith.constant 0 : i32
    %c0_i32_0 = arith.constant 0 : i32
    %c0_i32_1 = arith.constant 0 : i32
    return %c0_i32, %c0_i32_0 : i32, i32
  }
  func.func @transform_8(%arg0: i32) -> (i32, i32) {
    %c0_i32 = arith.constant 0 : i32
    %c0_i32_0 = arith.constant 0 : i32
    %c0_i32_1 = arith.constant 0 : i32
    return %c0_i32, %c0_i32_0 : i32, i32
  }
  func.func @transform_9(%arg0: i32) -> (i32, i32) {
    %c0_i32 = arith.constant 0 : i32
    %c0_i32_0 = arith.constant 0 : i32
    %c0_i32_1 = arith.constant 0 : i32
    return %c0_i32, %c0_i32_0 : i32, i32
  }
  func.func @transform_10(%arg0: i32) -> (i32, i32) {
    %c0_i32 = arith.constant 0 : i32
    %c0_i32_0 = arith.constant 0 : i32
    return %arg0, %c0_i32 : i32, i32
  }
  func.func @transform_11(%arg0: i32) -> (i32, i32) {
    %c0_i32 = arith.constant 0 : i32
    %c0_i32_0 = arith.constant 0 : i32
    return %arg0, %c0_i32 : i32, i32
  }
  func.func @transform_12(%arg0: i32) -> (i32, i32) {
    %c0_i32 = arith.constant 0 : i32
    %c0_i32_0 = arith.constant 0 : i32
    return %arg0, %c0_i32 : i32, i32
  }
  func.func @transform_13(%arg0: i32) -> (i32, i32) {
    %c0_i32 = arith.constant 0 : i32
    %c0_i32_0 = arith.constant 0 : i32
    return %arg0, %c0_i32 : i32, i32
  }
}

module attributes {stable_mosaic.version = 11 : i64} {
  func.func @_tail_qkv_kernel(%arg0: i32, %arg1: memref<16x32xf32, #tpu.memory_space<vmem>>, %arg2: memref<16x32xf32, #tpu.memory_space<vmem>>, %arg3: memref<32x32xf32, #tpu.memory_space<vmem>>, %arg4: memref<1x32xf32, #tpu.memory_space<vmem>>, %arg5: memref<1x32xf32, #tpu.memory_space<vmem>>, %arg6: memref<1x32xf32, #tpu.memory_space<vmem>>, %arg7: memref<32x64xf32, #tpu.memory_space<vmem>>, %arg8: memref<1x64xf32, #tpu.memory_space<vmem>>, %arg9: memref<64x32xf32, #tpu.memory_space<vmem>>, %arg10: memref<1x32xf32, #tpu.memory_space<vmem>>, %arg11: memref<1x32xf32, #tpu.memory_space<vmem>>, %arg12: memref<1x32xf32, #tpu.memory_space<vmem>>, %arg13: memref<32x96xf32, #tpu.memory_space<vmem>>, %arg14: memref<1x96xf32, #tpu.memory_space<vmem>>, %arg15: memref<16x32xf32, #tpu.memory_space<vmem>>, %arg16: memref<16x32xf32, #tpu.memory_space<vmem>>, %arg17: memref<16x32xf32, #tpu.memory_space<vmem>>, %arg18: memref<16x32xf32, #tpu.memory_space<vmem>>) attributes {dimension_semantics = [#tpu.dimension_semantics<parallel>], iteration_bounds = array<i64: 1>, scalar_prefetch = 0 : i64, scratch_operands = 0 : i64, tpu.core_type = #tpu.core_type<tc>, window_params = [{transform_indices = @transform_0, window_bounds = array<i64: 16, 32>}, {transform_indices = @transform_1, window_bounds = array<i64: 16, 32>}, {pipeline_mode = #tpu.pipeline_mode<synchronous>, transform_indices = @transform_2, window_bounds = array<i64: 32, 32>}, {pipeline_mode = #tpu.pipeline_mode<synchronous>, transform_indices = @transform_3, window_bounds = array<i64: 1, 32>}, {pipeline_mode = #tpu.pipeline_mode<synchronous>, transform_indices = @transform_4, window_bounds = array<i64: 1, 32>}, {pipeline_mode = #tpu.pipeline_mode<synchronous>, transform_indices = @transform_5, window_bounds = array<i64: 1, 32>}, {pipeline_mode = #tpu.pipeline_mode<synchronous>, transform_indices = @transform_6, window_bounds = array<i64: 32, 64>}, {pipeline_mode = #tpu.pipeline_mode<synchronous>, transform_indices = @transform_7, window_bounds = array<i64: 1, 64>}, {pipeline_mode = #tpu.pipeline_mode<synchronous>, transform_indices = @transform_8, window_bounds = array<i64: 64, 32>}, {pipeline_mode = #tpu.pipeline_mode<synchronous>, transform_indices = @transform_9, window_bounds = array<i64: 1, 32>}, {pipeline_mode = #tpu.pipeline_mode<synchronous>, transform_indices = @transform_10, window_bounds = array<i64: 1, 32>}, {pipeline_mode = #tpu.pipeline_mode<synchronous>, transform_indices = @transform_11, window_bounds = array<i64: 1, 32>}, {pipeline_mode = #tpu.pipeline_mode<synchronous>, transform_indices = @transform_12, window_bounds = array<i64: 32, 96>}, {pipeline_mode = #tpu.pipeline_mode<synchronous>, transform_indices = @transform_13, window_bounds = array<i64: 1, 96>}, {transform_indices = @transform_14, window_bounds = array<i64: 16, 32>}, {transform_indices = @transform_15, window_bounds = array<i64: 16, 32>}, {transform_indices = @transform_16, window_bounds = array<i64: 16, 32>}, {transform_indices = @transform_17, window_bounds = array<i64: 16, 32>}]} {
    %c0 = arith.constant 0 : index
    %c0_0 = arith.constant 0 : index
    %0 = vector.load %arg1[%c0, %c0_0] : memref<16x32xf32, #tpu.memory_space<vmem>>, vector<16x32xf32>
    %c0_1 = arith.constant 0 : index
    %c0_2 = arith.constant 0 : index
    %1 = vector.load %arg2[%c0_1, %c0_2] : memref<16x32xf32, #tpu.memory_space<vmem>>, vector<16x32xf32>
    %c0_3 = arith.constant 0 : index
    %c0_4 = arith.constant 0 : index
    %2 = vector.load %arg3[%c0_3, %c0_4] : memref<32x32xf32, #tpu.memory_space<vmem>>, vector<32x32xf32>
    %c0_5 = arith.constant 0 : index
    %c0_6 = arith.constant 0 : index
    %3 = vector.load %arg4[%c0_5, %c0_6] : memref<1x32xf32, #tpu.memory_space<vmem>>, vector<1x32xf32>
    %c0_7 = arith.constant 0 : index
    %c0_8 = arith.constant 0 : index
    %4 = vector.load %arg5[%c0_7, %c0_8] : memref<1x32xf32, #tpu.memory_space<vmem>>, vector<1x32xf32>
    %c0_9 = arith.constant 0 : index
    %c0_10 = arith.constant 0 : index
    %5 = vector.load %arg6[%c0_9, %c0_10] : memref<1x32xf32, #tpu.memory_space<vmem>>, vector<1x32xf32>
    %c0_11 = arith.constant 0 : index
    %c0_12 = arith.constant 0 : index
    %6 = vector.load %arg7[%c0_11, %c0_12] : memref<32x64xf32, #tpu.memory_space<vmem>>, vector<32x64xf32>
    %c0_13 = arith.constant 0 : index
    %c0_14 = arith.constant 0 : index
    %7 = vector.load %arg8[%c0_13, %c0_14] : memref<1x64xf32, #tpu.memory_space<vmem>>, vector<1x64xf32>
    %c0_15 = arith.constant 0 : index
    %c0_16 = arith.constant 0 : index
    %8 = vector.load %arg9[%c0_15, %c0_16] : memref<64x32xf32, #tpu.memory_space<vmem>>, vector<64x32xf32>
    %c0_17 = arith.constant 0 : index
    %c0_18 = arith.constant 0 : index
    %9 = vector.load %arg10[%c0_17, %c0_18] : memref<1x32xf32, #tpu.memory_space<vmem>>, vector<1x32xf32>
    %c0_19 = arith.constant 0 : index
    %c0_20 = arith.constant 0 : index
    %10 = vector.load %arg11[%c0_19, %c0_20] : memref<1x32xf32, #tpu.memory_space<vmem>>, vector<1x32xf32>
    %c0_21 = arith.constant 0 : index
    %c0_22 = arith.constant 0 : index
    %11 = vector.load %arg12[%c0_21, %c0_22] : memref<1x32xf32, #tpu.memory_space<vmem>>, vector<1x32xf32>
    %cst = arith.constant dense<0.000000e+00> : vector<16x32xf32>
    %12 = tpu.matmul %0, %2, %cst {dimension_numbers = #tpu.dot_dimension_numbers<[1], [0], [0], [1], [0, 0, 1, 1], [], []>} : vector<16x32xf32>, vector<32x32xf32>, vector<16x32xf32> -> vector<16x32xf32>
    %13 = vector.broadcast %3 : vector<1x32xf32> to vector<16x32xf32>
    %14 = arith.addf %12, %13 : vector<16x32xf32>
    %15 = arith.addf %1, %14 : vector<16x32xf32>
    %cst_23 = arith.constant dense<0.000000e+00> : vector<16xf32>
    %16 = vector.multi_reduction <add>, %15, %cst_23 [1] : vector<16x32xf32> to vector<16xf32>
    %17 = vector.shape_cast %16 : vector<16xf32> to vector<16x1xf32>
    %cst_24 = arith.constant 3.200000e+01 : f32
    %18 = vector.broadcast %cst_24 : f32 to vector<16x1xf32>
    %19 = arith.divf %17, %18 : vector<16x1xf32>
    %20 = vector.broadcast %19 : vector<16x1xf32> to vector<16x32xf32>
    %21 = arith.subf %15, %20 : vector<16x32xf32>
    %22 = arith.mulf %21, %21 : vector<16x32xf32>
    %cst_25 = arith.constant dense<0.000000e+00> : vector<16xf32>
    %23 = vector.multi_reduction <add>, %22, %cst_25 [1] : vector<16x32xf32> to vector<16xf32>
    %24 = vector.shape_cast %23 : vector<16xf32> to vector<16x1xf32>
    %cst_26 = arith.constant 3.200000e+01 : f32
    %25 = vector.broadcast %cst_26 : f32 to vector<16x1xf32>
    %26 = arith.divf %24, %25 : vector<16x1xf32>
    %27 = vector.broadcast %19 : vector<16x1xf32> to vector<16x32xf32>
    %28 = arith.subf %15, %27 : vector<16x32xf32>
    %cst_27 = arith.constant 9.99999974E-6 : f32
    %29 = vector.broadcast %cst_27 : f32 to vector<16x1xf32>
    %30 = arith.addf %26, %29 : vector<16x1xf32>
    %31 = math.rsqrt %30 : vector<16x1xf32>
    %32 = vector.broadcast %31 : vector<16x1xf32> to vector<16x32xf32>
    %33 = arith.mulf %28, %32 : vector<16x32xf32>
    %34 = vector.broadcast %4 : vector<1x32xf32> to vector<16x32xf32>
    %35 = arith.mulf %33, %34 : vector<16x32xf32>
    %36 = vector.broadcast %5 : vector<1x32xf32> to vector<16x32xf32>
    %37 = arith.addf %35, %36 : vector<16x32xf32>
    %cst_28 = arith.constant dense<0.000000e+00> : vector<16x64xf32>
    %38 = tpu.matmul %37, %6, %cst_28 {dimension_numbers = #tpu.dot_dimension_numbers<[1], [0], [0], [1], [0, 0, 1, 1], [], []>} : vector<16x32xf32>, vector<32x64xf32>, vector<16x64xf32> -> vector<16x64xf32>
    %39 = vector.broadcast %7 : vector<1x64xf32> to vector<16x64xf32>
    %40 = arith.addf %38, %39 : vector<16x64xf32>
    %cst_29 = arith.constant 0.000000e+00 : f32
    %41 = vector.broadcast %cst_29 : f32 to vector<16x64xf32>
    %42 = arith.maximumf %40, %41 : vector<16x64xf32>
    %cst_30 = arith.constant dense<0.000000e+00> : vector<16x32xf32>
    %43 = tpu.matmul %42, %8, %cst_30 {dimension_numbers = #tpu.dot_dimension_numbers<[1], [0], [0], [1], [0, 0, 1, 1], [], []>} : vector<16x64xf32>, vector<64x32xf32>, vector<16x32xf32> -> vector<16x32xf32>
    %44 = vector.broadcast %9 : vector<1x32xf32> to vector<16x32xf32>
    %45 = arith.addf %43, %44 : vector<16x32xf32>
    %46 = arith.addf %37, %45 : vector<16x32xf32>
    %cst_31 = arith.constant dense<0.000000e+00> : vector<16xf32>
    %47 = vector.multi_reduction <add>, %46, %cst_31 [1] : vector<16x32xf32> to vector<16xf32>
    %48 = vector.shape_cast %47 : vector<16xf32> to vector<16x1xf32>
    %cst_32 = arith.constant 3.200000e+01 : f32
    %49 = vector.broadcast %cst_32 : f32 to vector<16x1xf32>
    %50 = arith.divf %48, %49 : vector<16x1xf32>
    %51 = vector.broadcast %50 : vector<16x1xf32> to vector<16x32xf32>
    %52 = arith.subf %46, %51 : vector<16x32xf32>
    %53 = arith.mulf %52, %52 : vector<16x32xf32>
    %cst_33 = arith.constant dense<0.000000e+00> : vector<16xf32>
    %54 = vector.multi_reduction <add>, %53, %cst_33 [1] : vector<16x32xf32> to vector<16xf32>
    %55 = vector.shape_cast %54 : vector<16xf32> to vector<16x1xf32>
    %cst_34 = arith.constant 3.200000e+01 : f32
    %56 = vector.broadcast %cst_34 : f32 to vector<16x1xf32>
    %57 = arith.divf %55, %56 : vector<16x1xf32>
    %58 = vector.broadcast %50 : vector<16x1xf32> to vector<16x32xf32>
    %59 = arith.subf %46, %58 : vector<16x32xf32>
    %cst_35 = arith.constant 9.99999974E-6 : f32
    %60 = vector.broadcast %cst_35 : f32 to vector<16x1xf32>
    %61 = arith.addf %57, %60 : vector<16x1xf32>
    %62 = math.rsqrt %61 : vector<16x1xf32>
    %63 = vector.broadcast %62 : vector<16x1xf32> to vector<16x32xf32>
    %64 = arith.mulf %59, %63 : vector<16x32xf32>
    %65 = vector.broadcast %10 : vector<1x32xf32> to vector<16x32xf32>
    %66 = arith.mulf %64, %65 : vector<16x32xf32>
    %67 = vector.broadcast %11 : vector<1x32xf32> to vector<16x32xf32>
    %68 = arith.addf %66, %67 : vector<16x32xf32>
    %c0_36 = arith.constant 0 : index
    %c0_37 = arith.constant 0 : index
    %69 = vector.load %arg15[%c0_36, %c0_37] : memref<16x32xf32, #tpu.memory_space<vmem>>, vector<16x32xf32>
    tpu.vector_store %arg15[%c0_36, %c0_37], %68 {strides = array<i32>} : memref<16x32xf32, #tpu.memory_space<vmem>>, vector<16x32xf32>,
    %c0_38 = arith.constant 0 : index
    %c0_39 = arith.constant 0 : index
    %70 = vector.load %arg13[%c0_38, %c0_39] : memref<32x96xf32, #tpu.memory_space<vmem>>, vector<32x96xf32>
    %c0_40 = arith.constant 0 : index
    %c0_41 = arith.constant 0 : index
    %71 = vector.load %arg14[%c0_40, %c0_41] : memref<1x96xf32, #tpu.memory_space<vmem>>, vector<1x96xf32>
    %cst_42 = arith.constant dense<0.000000e+00> : vector<16x96xf32>
    %72 = tpu.matmul %68, %70, %cst_42 {dimension_numbers = #tpu.dot_dimension_numbers<[1], [0], [0], [1], [0, 0, 1, 1], [], []>} : vector<16x32xf32>, vector<32x96xf32>, vector<16x96xf32> -> vector<16x96xf32>
    %73 = vector.broadcast %71 : vector<1x96xf32> to vector<16x96xf32>
    %74 = arith.addf %72, %73 : vector<16x96xf32>
    %75 = vector.extract_strided_slice %74 {offsets = [0, 0], sizes = [16, 32], strides = [1, 1]} : vector<16x96xf32> to vector<16x32xf32>
    %c0_43 = arith.constant 0 : index
    %c0_44 = arith.constant 0 : index
    %76 = vector.load %arg16[%c0_43, %c0_44] : memref<16x32xf32, #tpu.memory_space<vmem>>, vector<16x32xf32>
    tpu.vector_store %arg16[%c0_43, %c0_44], %75 {strides = array<i32>} : memref<16x32xf32, #tpu.memory_space<vmem>>, vector<16x32xf32>,
    %77 = vector.extract_strided_slice %74 {offsets = [0, 32], sizes = [16, 32], strides = [1, 1]} : vector<16x96xf32> to vector<16x32xf32>
    %c0_45 = arith.constant 0 : index
    %c0_46 = arith.constant 0 : index
    %78 = vector.load %arg17[%c0_45, %c0_46] : memref<16x32xf32, #tpu.memory_space<vmem>>, vector<16x32xf32>
    tpu.vector_store %arg17[%c0_45, %c0_46], %77 {strides = array<i32>} : memref<16x32xf32, #tpu.memory_space<vmem>>, vector<16x32xf32>,
    %79 = vector.extract_strided_slice %74 {offsets = [0, 64], sizes = [16, 32], strides = [1, 1]} : vector<16x96xf32> to vector<16x32xf32>
    %c0_47 = arith.constant 0 : index
    %c0_48 = arith.constant 0 : index
    %80 = vector.load %arg18[%c0_47, %c0_48] : memref<16x32xf32, #tpu.memory_space<vmem>>, vector<16x32xf32>
    tpu.vector_store %arg18[%c0_47, %c0_48], %79 {strides = array<i32>} : memref<16x32xf32, #tpu.memory_space<vmem>>, vector<16x32xf32>,
    return
  }
  func.func @transform_0(%arg0: i32) -> (i32, i32) {
    %c0_i32 = arith.constant 0 : i32
    %c0_i32_0 = arith.constant 0 : i32
    return %arg0, %c0_i32 : i32, i32
  }
  func.func @transform_1(%arg0: i32) -> (i32, i32) {
    %c0_i32 = arith.constant 0 : i32
    %c0_i32_0 = arith.constant 0 : i32
    return %arg0, %c0_i32 : i32, i32
  }
  func.func @transform_2(%arg0: i32) -> (i32, i32) {
    %c0_i32 = arith.constant 0 : i32
    %c0_i32_0 = arith.constant 0 : i32
    %c0_i32_1 = arith.constant 0 : i32
    return %c0_i32, %c0_i32_0 : i32, i32
  }
  func.func @transform_3(%arg0: i32) -> (i32, i32) {
    %c0_i32 = arith.constant 0 : i32
    %c0_i32_0 = arith.constant 0 : i32
    %c0_i32_1 = arith.constant 0 : i32
    return %c0_i32, %c0_i32_0 : i32, i32
  }
  func.func @transform_4(%arg0: i32) -> (i32, i32) {
    %c0_i32 = arith.constant 0 : i32
    %c0_i32_0 = arith.constant 0 : i32
    %c0_i32_1 = arith.constant 0 : i32
    return %c0_i32, %c0_i32_0 : i32, i32
  }
  func.func @transform_5(%arg0: i32) -> (i32, i32) {
    %c0_i32 = arith.constant 0 : i32
    %c0_i32_0 = arith.constant 0 : i32
    %c0_i32_1 = arith.constant 0 : i32
    return %c0_i32, %c0_i32_0 : i32, i32
  }
  func.func @transform_6(%arg0: i32) -> (i32, i32) {
    %c0_i32 = arith.constant 0 : i32
    %c0_i32_0 = arith.constant 0 : i32
    %c0_i32_1 = arith.constant 0 : i32
    return %c0_i32, %c0_i32_0 : i32, i32
  }
  func.func @transform_7(%arg0: i32) -> (i32, i32) {
    %c0_i32 = arith.constant 0 : i32
    %c0_i32_0 = arith.constant 0 : i32
    %c0_i32_1 = arith.constant 0 : i32
    return %c0_i32, %c0_i32_0 : i32, i32
  }
  func.func @transform_8(%arg0: i32) -> (i32, i32) {
    %c0_i32 = arith.constant 0 : i32
    %c0_i32_0 = arith.constant 0 : i32
    %c0_i32_1 = arith.constant 0 : i32
    return %c0_i32, %c0_i32_0 : i32, i32
  }
  func.func @transform_9(%arg0: i32) -> (i32, i32) {
    %c0_i32 = arith.constant 0 : i32
    %c0_i32_0 = arith.constant 0 : i32
    %c0_i32_1 = arith.constant 0 : i32
    return %c0_i32, %c0_i32_0 : i32, i32
  }
  func.func @transform_10(%arg0: i32) -> (i32, i32) {
    %c0_i32 = arith.constant 0 : i32
    %c0_i32_0 = arith.constant 0 : i32
    %c0_i32_1 = arith.constant 0 : i32
    return %c0_i32, %c0_i32_0 : i32, i32
  }
  func.func @transform_11(%arg0: i32) -> (i32, i32) {
    %c0_i32 = arith.constant 0 : i32
    %c0_i32_0 = arith.constant 0 : i32
    %c0_i32_1 = arith.constant 0 : i32
    return %c0_i32, %c0_i32_0 : i32, i32
  }
  func.func @transform_12(%arg0: i32) -> (i32, i32) {
    %c0_i32 = arith.constant 0 : i32
    %c0_i32_0 = arith.constant 0 : i32
    %c0_i32_1 = arith.constant 0 : i32
    return %c0_i32, %c0_i32_0 : i32, i32
  }
  func.func @transform_13(%arg0: i32) -> (i32, i32) {
    %c0_i32 = arith.constant 0 : i32
    %c0_i32_0 = arith.constant 0 : i32
    %c0_i32_1 = arith.constant 0 : i32
    return %c0_i32, %c0_i32_0 : i32, i32
  }
  func.func @transform_14(%arg0: i32) -> (i32, i32) {
    %c0_i32 = arith.constant 0 : i32
    %c0_i32_0 = arith.constant 0 : i32
    return %arg0, %c0_i32 : i32, i32
  }
  func.func @transform_15(%arg0: i32) -> (i32, i32) {
    %c0_i32 = arith.constant 0 : i32
    %c0_i32_0 = arith.constant 0 : i32
    return %arg0, %c0_i32 : i32, i32
  }
  func.func @transform_16(%arg0: i32) -> (i32, i32) {
    %c0_i32 = arith.constant 0 : i32
    %c0_i32_0 = arith.constant 0 : i32
    return %arg0, %c0_i32 : i32, i32
  }
  func.func @transform_17(%arg0: i32) -> (i32, i32) {
    %c0_i32 = arith.constant 0 : i32
    %c0_i32_0 = arith.constant 0 : i32
    return %arg0, %c0_i32 : i32, i32
  }
}

module attributes {stable_mosaic.version = 11 : i64} {
  func.func @_tail_kernel(%arg0: i32, %arg1: memref<16x32xf32, #tpu.memory_space<vmem>>, %arg2: memref<16x32xf32, #tpu.memory_space<vmem>>, %arg3: memref<32x32xf32, #tpu.memory_space<vmem>>, %arg4: memref<1x32xf32, #tpu.memory_space<vmem>>, %arg5: memref<1x32xf32, #tpu.memory_space<vmem>>, %arg6: memref<1x32xf32, #tpu.memory_space<vmem>>, %arg7: memref<32x64xf32, #tpu.memory_space<vmem>>, %arg8: memref<1x64xf32, #tpu.memory_space<vmem>>, %arg9: memref<64x32xf32, #tpu.memory_space<vmem>>, %arg10: memref<1x32xf32, #tpu.memory_space<vmem>>, %arg11: memref<1x32xf32, #tpu.memory_space<vmem>>, %arg12: memref<1x32xf32, #tpu.memory_space<vmem>>, %arg13: memref<16x32xf32, #tpu.memory_space<vmem>>) attributes {dimension_semantics = [#tpu.dimension_semantics<parallel>], iteration_bounds = array<i64: 1>, scalar_prefetch = 0 : i64, scratch_operands = 0 : i64, tpu.core_type = #tpu.core_type<tc>, window_params = [{transform_indices = @transform_0, window_bounds = array<i64: 16, 32>}, {transform_indices = @transform_1, window_bounds = array<i64: 16, 32>}, {pipeline_mode = #tpu.pipeline_mode<synchronous>, transform_indices = @transform_2, window_bounds = array<i64: 32, 32>}, {pipeline_mode = #tpu.pipeline_mode<synchronous>, transform_indices = @transform_3, window_bounds = array<i64: 1, 32>}, {pipeline_mode = #tpu.pipeline_mode<synchronous>, transform_indices = @transform_4, window_bounds = array<i64: 1, 32>}, {pipeline_mode = #tpu.pipeline_mode<synchronous>, transform_indices = @transform_5, window_bounds = array<i64: 1, 32>}, {pipeline_mode = #tpu.pipeline_mode<synchronous>, transform_indices = @transform_6, window_bounds = array<i64: 32, 64>}, {pipeline_mode = #tpu.pipeline_mode<synchronous>, transform_indices = @transform_7, window_bounds = array<i64: 1, 64>}, {pipeline_mode = #tpu.pipeline_mode<synchronous>, transform_indices = @transform_8, window_bounds = array<i64: 64, 32>}, {pipeline_mode = #tpu.pipeline_mode<synchronous>, transform_indices = @transform_9, window_bounds = array<i64: 1, 32>}, {pipeline_mode = #tpu.pipeline_mode<synchronous>, transform_indices = @transform_10, window_bounds = array<i64: 1, 32>}, {pipeline_mode = #tpu.pipeline_mode<synchronous>, transform_indices = @transform_11, window_bounds = array<i64: 1, 32>}, {transform_indices = @transform_12, window_bounds = array<i64: 16, 32>}]} {
    %c0 = arith.constant 0 : index
    %c0_0 = arith.constant 0 : index
    %0 = vector.load %arg1[%c0, %c0_0] : memref<16x32xf32, #tpu.memory_space<vmem>>, vector<16x32xf32>
    %c0_1 = arith.constant 0 : index
    %c0_2 = arith.constant 0 : index
    %1 = vector.load %arg2[%c0_1, %c0_2] : memref<16x32xf32, #tpu.memory_space<vmem>>, vector<16x32xf32>
    %c0_3 = arith.constant 0 : index
    %c0_4 = arith.constant 0 : index
    %2 = vector.load %arg3[%c0_3, %c0_4] : memref<32x32xf32, #tpu.memory_space<vmem>>, vector<32x32xf32>
    %c0_5 = arith.constant 0 : index
    %c0_6 = arith.constant 0 : index
    %3 = vector.load %arg4[%c0_5, %c0_6] : memref<1x32xf32, #tpu.memory_space<vmem>>, vector<1x32xf32>
    %c0_7 = arith.constant 0 : index
    %c0_8 = arith.constant 0 : index
    %4 = vector.load %arg5[%c0_7, %c0_8] : memref<1x32xf32, #tpu.memory_space<vmem>>, vector<1x32xf32>
    %c0_9 = arith.constant 0 : index
    %c0_10 = arith.constant 0 : index
    %5 = vector.load %arg6[%c0_9, %c0_10] : memref<1x32xf32, #tpu.memory_space<vmem>>, vector<1x32xf32>
    %c0_11 = arith.constant 0 : index
    %c0_12 = arith.constant 0 : index
    %6 = vector.load %arg7[%c0_11, %c0_12] : memref<32x64xf32, #tpu.memory_space<vmem>>, vector<32x64xf32>
    %c0_13 = arith.constant 0 : index
    %c0_14 = arith.constant 0 : index
    %7 = vector.load %arg8[%c0_13, %c0_14] : memref<1x64xf32, #tpu.memory_space<vmem>>, vector<1x64xf32>
    %c0_15 = arith.constant 0 : index
    %c0_16 = arith.constant 0 : index
    %8 = vector.load %arg9[%c0_15, %c0_16] : memref<64x32xf32, #tpu.memory_space<vmem>>, vector<64x32xf32>
    %c0_17 = arith.constant 0 : index
    %c0_18 = arith.constant 0 : index
    %9 = vector.load %arg10[%c0_17, %c0_18] : memref<1x32xf32, #tpu.memory_space<vmem>>, vector<1x32xf32>
    %c0_19 = arith.constant 0 : index
    %c0_20 = arith.constant 0 : index
    %10 = vector.load %arg11[%c0_19, %c0_20] : memref<1x32xf32, #tpu.memory_space<vmem>>, vector<1x32xf32>
    %c0_21 = arith.constant 0 : index
    %c0_22 = arith.constant 0 : index
    %11 = vector.load %arg12[%c0_21, %c0_22] : memref<1x32xf32, #tpu.memory_space<vmem>>, vector<1x32xf32>
    %cst = arith.constant dense<0.000000e+00> : vector<16x32xf32>
    %12 = tpu.matmul %0, %2, %cst {dimension_numbers = #tpu.dot_dimension_numbers<[1], [0], [0], [1], [0, 0, 1, 1], [], []>} : vector<16x32xf32>, vector<32x32xf32>, vector<16x32xf32> -> vector<16x32xf32>
    %13 = vector.broadcast %3 : vector<1x32xf32> to vector<16x32xf32>
    %14 = arith.addf %12, %13 : vector<16x32xf32>
    %15 = arith.addf %1, %14 : vector<16x32xf32>
    %cst_23 = arith.constant dense<0.000000e+00> : vector<16xf32>
    %16 = vector.multi_reduction <add>, %15, %cst_23 [1] : vector<16x32xf32> to vector<16xf32>
    %17 = vector.shape_cast %16 : vector<16xf32> to vector<16x1xf32>
    %cst_24 = arith.constant 3.200000e+01 : f32
    %18 = vector.broadcast %cst_24 : f32 to vector<16x1xf32>
    %19 = arith.divf %17, %18 : vector<16x1xf32>
    %20 = vector.broadcast %19 : vector<16x1xf32> to vector<16x32xf32>
    %21 = arith.subf %15, %20 : vector<16x32xf32>
    %22 = arith.mulf %21, %21 : vector<16x32xf32>
    %cst_25 = arith.constant dense<0.000000e+00> : vector<16xf32>
    %23 = vector.multi_reduction <add>, %22, %cst_25 [1] : vector<16x32xf32> to vector<16xf32>
    %24 = vector.shape_cast %23 : vector<16xf32> to vector<16x1xf32>
    %cst_26 = arith.constant 3.200000e+01 : f32
    %25 = vector.broadcast %cst_26 : f32 to vector<16x1xf32>
    %26 = arith.divf %24, %25 : vector<16x1xf32>
    %27 = vector.broadcast %19 : vector<16x1xf32> to vector<16x32xf32>
    %28 = arith.subf %15, %27 : vector<16x32xf32>
    %cst_27 = arith.constant 9.99999974E-6 : f32
    %29 = vector.broadcast %cst_27 : f32 to vector<16x1xf32>
    %30 = arith.addf %26, %29 : vector<16x1xf32>
    %31 = math.rsqrt %30 : vector<16x1xf32>
    %32 = vector.broadcast %31 : vector<16x1xf32> to vector<16x32xf32>
    %33 = arith.mulf %28, %32 : vector<16x32xf32>
    %34 = vector.broadcast %4 : vector<1x32xf32> to vector<16x32xf32>
    %35 = arith.mulf %33, %34 : vector<16x32xf32>
    %36 = vector.broadcast %5 : vector<1x32xf32> to vector<16x32xf32>
    %37 = arith.addf %35, %36 : vector<16x32xf32>
    %cst_28 = arith.constant dense<0.000000e+00> : vector<16x64xf32>
    %38 = tpu.matmul %37, %6, %cst_28 {dimension_numbers = #tpu.dot_dimension_numbers<[1], [0], [0], [1], [0, 0, 1, 1], [], []>} : vector<16x32xf32>, vector<32x64xf32>, vector<16x64xf32> -> vector<16x64xf32>
    %39 = vector.broadcast %7 : vector<1x64xf32> to vector<16x64xf32>
    %40 = arith.addf %38, %39 : vector<16x64xf32>
    %cst_29 = arith.constant 0.000000e+00 : f32
    %41 = vector.broadcast %cst_29 : f32 to vector<16x64xf32>
    %42 = arith.maximumf %40, %41 : vector<16x64xf32>
    %cst_30 = arith.constant dense<0.000000e+00> : vector<16x32xf32>
    %43 = tpu.matmul %42, %8, %cst_30 {dimension_numbers = #tpu.dot_dimension_numbers<[1], [0], [0], [1], [0, 0, 1, 1], [], []>} : vector<16x64xf32>, vector<64x32xf32>, vector<16x32xf32> -> vector<16x32xf32>
    %44 = vector.broadcast %9 : vector<1x32xf32> to vector<16x32xf32>
    %45 = arith.addf %43, %44 : vector<16x32xf32>
    %46 = arith.addf %37, %45 : vector<16x32xf32>
    %cst_31 = arith.constant dense<0.000000e+00> : vector<16xf32>
    %47 = vector.multi_reduction <add>, %46, %cst_31 [1] : vector<16x32xf32> to vector<16xf32>
    %48 = vector.shape_cast %47 : vector<16xf32> to vector<16x1xf32>
    %cst_32 = arith.constant 3.200000e+01 : f32
    %49 = vector.broadcast %cst_32 : f32 to vector<16x1xf32>
    %50 = arith.divf %48, %49 : vector<16x1xf32>
    %51 = vector.broadcast %50 : vector<16x1xf32> to vector<16x32xf32>
    %52 = arith.subf %46, %51 : vector<16x32xf32>
    %53 = arith.mulf %52, %52 : vector<16x32xf32>
    %cst_33 = arith.constant dense<0.000000e+00> : vector<16xf32>
    %54 = vector.multi_reduction <add>, %53, %cst_33 [1] : vector<16x32xf32> to vector<16xf32>
    %55 = vector.shape_cast %54 : vector<16xf32> to vector<16x1xf32>
    %cst_34 = arith.constant 3.200000e+01 : f32
    %56 = vector.broadcast %cst_34 : f32 to vector<16x1xf32>
    %57 = arith.divf %55, %56 : vector<16x1xf32>
    %58 = vector.broadcast %50 : vector<16x1xf32> to vector<16x32xf32>
    %59 = arith.subf %46, %58 : vector<16x32xf32>
    %cst_35 = arith.constant 9.99999974E-6 : f32
    %60 = vector.broadcast %cst_35 : f32 to vector<16x1xf32>
    %61 = arith.addf %57, %60 : vector<16x1xf32>
    %62 = math.rsqrt %61 : vector<16x1xf32>
    %63 = vector.broadcast %62 : vector<16x1xf32> to vector<16x32xf32>
    %64 = arith.mulf %59, %63 : vector<16x32xf32>
    %65 = vector.broadcast %10 : vector<1x32xf32> to vector<16x32xf32>
    %66 = arith.mulf %64, %65 : vector<16x32xf32>
    %67 = vector.broadcast %11 : vector<1x32xf32> to vector<16x32xf32>
    %68 = arith.addf %66, %67 : vector<16x32xf32>
    %c0_36 = arith.constant 0 : index
    %c0_37 = arith.constant 0 : index
    %69 = vector.load %arg13[%c0_36, %c0_37] : memref<16x32xf32, #tpu.memory_space<vmem>>, vector<16x32xf32>
    tpu.vector_store %arg13[%c0_36, %c0_37], %68 {strides = array<i32>} : memref<16x32xf32, #tpu.memory_space<vmem>>, vector<16x32xf32>,
    return
  }
  func.func @transform_0(%arg0: i32) -> (i32, i32) {
    %c0_i32 = arith.constant 0 : i32
    %c0_i32_0 = arith.constant 0 : i32
    return %arg0, %c0_i32 : i32, i32
  }
  func.func @transform_1(%arg0: i32) -> (i32, i32) {
    %c0_i32 = arith.constant 0 : i32
    %c0_i32_0 = arith.constant 0 : i32
    return %arg0, %c0_i32 : i32, i32
  }
  func.func @transform_2(%arg0: i32) -> (i32, i32) {
    %c0_i32 = arith.constant 0 : i32
    %c0_i32_0 = arith.constant 0 : i32
    %c0_i32_1 = arith.constant 0 : i32
    return %c0_i32, %c0_i32_0 : i32, i32
  }
  func.func @transform_3(%arg0: i32) -> (i32, i32) {
    %c0_i32 = arith.constant 0 : i32
    %c0_i32_0 = arith.constant 0 : i32
    %c0_i32_1 = arith.constant 0 : i32
    return %c0_i32, %c0_i32_0 : i32, i32
  }
  func.func @transform_4(%arg0: i32) -> (i32, i32) {
    %c0_i32 = arith.constant 0 : i32
    %c0_i32_0 = arith.constant 0 : i32
    %c0_i32_1 = arith.constant 0 : i32
    return %c0_i32, %c0_i32_0 : i32, i32
  }
  func.func @transform_5(%arg0: i32) -> (i32, i32) {
    %c0_i32 = arith.constant 0 : i32
    %c0_i32_0 = arith.constant 0 : i32
    %c0_i32_1 = arith.constant 0 : i32
    return %c0_i32, %c0_i32_0 : i32, i32
  }
  func.func @transform_6(%arg0: i32) -> (i32, i32) {
    %c0_i32 = arith.constant 0 : i32
    %c0_i32_0 = arith.constant 0 : i32
    %c0_i32_1 = arith.constant 0 : i32
    return %c0_i32, %c0_i32_0 : i32, i32
  }
  func.func @transform_7(%arg0: i32) -> (i32, i32) {
    %c0_i32 = arith.constant 0 : i32
    %c0_i32_0 = arith.constant 0 : i32
    %c0_i32_1 = arith.constant 0 : i32
    return %c0_i32, %c0_i32_0 : i32, i32
  }
  func.func @transform_8(%arg0: i32) -> (i32, i32) {
    %c0_i32 = arith.constant 0 : i32
    %c0_i32_0 = arith.constant 0 : i32
    %c0_i32_1 = arith.constant 0 : i32
    return %c0_i32, %c0_i32_0 : i32, i32
  }
  func.func @transform_9(%arg0: i32) -> (i32, i32) {
    %c0_i32 = arith.constant 0 : i32
    %c0_i32_0 = arith.constant 0 : i32
    %c0_i32_1 = arith.constant 0 : i32
    return %c0_i32, %c0_i32_0 : i32, i32
  }
  func.func @transform_10(%arg0: i32) -> (i32, i32) {
    %c0_i32 = arith.constant 0 : i32
    %c0_i32_0 = arith.constant 0 : i32
    %c0_i32_1 = arith.constant 0 : i32
    return %c0_i32, %c0_i32_0 : i32, i32
  }
  func.func @transform_11(%arg0: i32) -> (i32, i32) {
    %c0_i32 = arith.constant 0 : i32
    %c0_i32_0 = arith.constant 0 : i32
    %c0_i32_1 = arith.constant 0 : i32
    return %c0_i32, %c0_i32_0 : i32, i32
  }
  func.func @transform_12(%arg0: i32) -> (i32, i32) {
    %c0_i32 = arith.constant 0 : i32
    %c0_i32_0 = arith.constant 0 : i32
    return %arg0, %c0_i32 : i32, i32
  }
}

</mosaic_0001>

<bundles_post_ra>
// kernel: encoder_new.5
= control target key start
LH: loop header
LB: loop body
LE: loop exit
PB: predicated region body
PF: predicated region fallthrough
CT: control target
= control target key end

     0   :  { %v359_v0 = vmov 0   ;;  %vm84_vm0 = vcmask 130048   ;;  %vm183_vm1 = vcmask 261120   ;;  %s361_s20 = smov 64   ;;  %s517_s1 = inlined_call_operand.vmem [shape: f32[16,1], index: 1, kind: input, shape index: {}]   ;;  %s518_s5 = inlined_call_operand.vmem [shape: f32[16,32], index: 5, kind: input, shape index: {}]   ;;  %s519_s3 = inlined_call_operand.vmem [shape: f32[1,16], index: 3, kind: input, shape index: {}]   ;;  %s520_s4 = inlined_call_operand.vmem [shape: f32[1,16], index: 4, kind: input, shape index: {}]   ;;  %s521_s8 = inlined_call_operand.vmem [shape: f32[32,96], index: 8, kind: input, shape index: {}]   ;;  %s522_s0 = inlined_call_operand.vmem [shape: f32[16,32], index: 0, kind: input, shape index: {}]   ;;  %s523_s7 = inlined_call_operand.vmem [shape: f32[1,32], index: 7, kind: input, shape index: {}]   ;;  %s524_s6 = inlined_call_operand.vmem [shape: f32[1,32], index: 6, kind: input, shape index: {}]   ;;  %s525_s2 = inlined_call_operand.vmem [shape: f32[16,32], index: 2, kind: input, shape index: {}]   ;;  %s526_s10 = inlined_call_operand.vmem [shape: f32[16,32], index: 10, kind: output, shape index: {0}]   ;;  %s527_s9 = inlined_call_operand.vmem [shape: f32[1,96], index: 9, kind: input, shape index: {}]   ;;  %s528_s11 = inlined_call_operand.vmem [shape: f32[16,32], index: 11, kind: output, shape index: {1}]   ;;  %s529_s12 = inlined_call_operand.vmem [shape: f32[16,32], index: 12, kind: output, shape index: {2}]   ;;  %s530_s13 = inlined_call_operand.vmem [shape: f32[16,32], index: 13, kind: output, shape index: {3}]  }
   0x1   :  { %354 = vset.pattern.permute.xlu0 %v359_v0  ;;  %v39_v1 = vld [vmem:[%s517_s1] sm:$0xff]  ;;  %v40_v2 = vld [vmem:[%s517_s1 + $0x8] sm:$0xff]  ;;  %v189_v19 = vld [vmem:[%s521_s8 + $0x18] sm:$0xff] }
   0x2   :  { %44 = vperm.xlu0 %354, %v39_v1   ;;  %v76_v3 = vld [vmem:[%s518_s5 + $0x8] sm:$0xff]  ;;  %v75_v4 = vld [vmem:[%s518_s5] sm:$0xff]  ;;  %340 = vmatprep.subr.mxu1 %v189_v19  ;;  %v188_v20 = vld [vmem:[%s521_s8 + $0x10] sm:$0xff] }
   0x3   :  { %333 = vmatprep.subr.mxu0 %v76_v3  ;;  %v314_v5 = vld [vmem:[%s519_s3] ss:$0 sm:$0xff]  ;;  %341 = vmatpush3.msra.mxu1 %v189_v19  ;;  %v187_v21 = vld [vmem:[%s521_s8 + $0x8] sm:$0xff] }
   0x4   :  { %334 = vmatpush3.msra.mxu0 %v76_v3  ;;  %v315_v6 = vld [vmem:[%s520_s4] ss:$0 sm:$0xff]  ;;  %342 = vmatprep.subr.mxu1 %v188_v20  ;;  %v167_v23 = vld [vmem:[%s522_s0 + $0x8] sm:$0xff]  ;;  %s360_s4 = smov 96  }
   0x5   :  { %335 = vmatprep.subr.mxu0 %v75_v4  ;;  %343 = vmatpush3.msra.mxu1 %v188_v20  ;;  %v186_v22 = vld [vmem:[%s521_s8] sm:$0xff]  ;;  %v180_v32 = vld [vmem:[%s525_s2 + $0x8] sm:$0xff] }
   0x6   :  { %49 = vperm.xlu0 %354, %v40_v2   ;;  %336 = vmatpush3.msra.mxu0 %v75_v4  ;;  %v319_v24 = vld [vmem:[%s523_s7] ss:$0 sm:$0xff] }
   0x7   :  { %344 = vmatprep.subr.mxu1 %v187_v21  ;;  %v316_v25 = vld [vmem:[%s524_s6] ss:$0 sm:$0xff]  ;;  %v176_v27 = vadd.f32 %v319_v24, %v167_v23 }
   0x8   :  { %345 = vmatpush3.msra.mxu1 %v187_v21  ;;  %v166_v26 = vld [vmem:[%s522_s0] sm:$0xff] }
   0x9   :  { %346 = vmatprep.subr.mxu1 %v186_v22  ;;  %v175_v30 = vadd.f32 %v319_v24, %v166_v26  ;;  %v179_v35 = vld [vmem:[%s525_s2] sm:$0xff] }
   0xa   :  { %347 = vmatpush3.msra.mxu1 %v186_v22  ;;  %v320_v39 = vld [vmem:[%s527_s9] ss:$0 sm:$0xff] }
  0x7d   :  { %v45_v7 = vpop.permute.xlu0 %44 }
  0x7e   :  { %v58_v8 = vmul.f32 %v314_v5, %v45_v7 }
  0x80   :  { %v67_v9 = vadd.f32 %v315_v6, %v58_v8 }
  0x81   :  { %v50_v10 = vpop.permute.xlu0 %49 }
  0x82   :  { %v69_v11 = vmul.f32 %v67_v9, %v67_v9  ;;  %v59_v12 = vmul.f32 %v314_v5, %v50_v10 }
  0x84   :  { %355 = vtanh.f32 %v69_v11  ;;  %v68_v13 = vadd.f32 %v315_v6, %v59_v12 }
  0x86   :  { %v70_v14 = vmul.f32 %v68_v13, %v68_v13 }
  0x88   :  { %357 = vtanh.f32 %v70_v14 }
  0x91   :  { %v356_v15 = vpop.eup %355 }
  0x92   :  { %v73_v16 = vsub.f32 1.0, %v356_v15 }
  0x94   :  { %337 = vmatprep.mubr.msk.f32.mxu0 %vm84_vm0, %v73_v16 }
  0x95   :  { %v358_v17 = vpop.eup %357 }
  0x96   :  { %v74_v18 = vsub.f32 1.0, %v358_v17 }
  0x98   :  { %338 = vmatmul.mubr.msk.f32.vlgmr.msra.gmra.mxu0 %vm84_vm0, %v74_v18 }
 0x158   :  { %v339_v28 = vpop.f32.mrf.mxu0 }
 0x159   :  { %v163_v29 = vadd.f32 %v339_v28, %v316_v25 }
 0x15a   :  { %v157_v31 = vpop.f32.mrf.mxu0 }
 0x15b   :  { %v178_v33 = vadd.f32 %v176_v27, %v163_v29  ;;  %v158_v34 = vadd.f32 %v316_v25, %v157_v31 }
 0x15d   :  { %v177_v36 = vadd.f32 %v175_v30, %v158_v34  ;;  %v182_v37 = vadd.f32 %v180_v32, %v178_v33 }
 0x15f   :  { %v181_v38 = vadd.f32 %v179_v35, %v177_v36  ;;  %185 = vst.msk [vmem:[%s526_s10 + $0x8] sm:$0xff] %vm183_vm1, %v182_v37 }
 0x161   :  { %184 = vst.msk [vmem:[%s526_s10] sm:$0xff] %vm183_vm1, %v181_v38  ;;  %348 = vmatprep.mubr.msk.f32.mxu1 %vm183_vm1, %v181_v38 }
 0x162   :  { %349 = vmatmul.mubr.msk.f32.vlgmr.msra.gmra.mxu1 %vm183_vm1, %v182_v37 }
 0x222   :  { %v350_v40 = vpop.f32.mrf.mxu1 }
 0x223   :  { %v275_v41 = vadd.f32 %v350_v40, %v320_v39 }
 0x224   :  { %v269_v42 = vpop.f32.mrf.mxu1 }
 0x225   :  { %279 = vst.msk [vmem:[%s528_s11 + $0x8] sm:$0xff] %vm183_vm1, %v275_v41  ;;  %v270_v43 = vadd.f32 %v320_v39, %v269_v42  ;;  %284 = vrot.lane.b32.xlu1 %v275_v41, %s360_s4 }
 0x227   :  { %278 = vst.msk [vmem:[%s528_s11] sm:$0xff] %vm183_vm1, %v270_v43  ;;  %290 = vrot.lane.b32.xlu0 %v270_v43, %s361_s20 }
 0x229   :  { %282 = vrot.lane.b32.xlu1 %v270_v43, %s360_s4 }
 0x22d   :  { %292 = vrot.lane.b32.xlu1 %v275_v41, %s361_s20 }
 0x297   :  { %v285_v44 = vpop.permute.xlu1 %284 }
 0x298   :  { %289 = vst.msk [vmem:[%s529_s12 + $0x8] sm:$0xff] %vm183_vm1, %v285_v44 }
 0x299   :  { %v291_v45 = vpop.permute.xlu0 %290 }
 0x29a   :  { %296 = vst.msk [vmem:[%s530_s13] sm:$0xff] %vm183_vm1, %v291_v45 }
 0x29b   :  { %v283_v46 = vpop.permute.xlu1 %282 }
 0x29c   :  { %288 = vst.msk [vmem:[%s529_s12] sm:$0xff] %vm183_vm1, %v283_v46 }
 0x29f   :  { %v293_v47 = vpop.permute.xlu1 %292 }
 0x2a0   :  { %297 = vst.msk [vmem:[%s530_s13 + $0x8] sm:$0xff] %vm183_vm1, %v293_v47 }

// kernel: encoder_new.6
= control target key start
LH: loop header
LB: loop body
LE: loop exit
PB: predicated region body
PF: predicated region fallthrough
CT: control target
= control target key end

     0   :  { %s1205_s15 = smov 0   ;;  %s1289_s0 = inlined_call_operand.vmem [shape: f32[2,4,8,8], index: 0, kind: input, shape index: {}]   ;;  %s1290_s1 = inlined_call_operand.vmem [shape: f32[2,4,8,8], index: 1, kind: input, shape index: {}]   ;;  %s1291_s2 = inlined_call_operand.vmem [shape: f32[2,4,8,8], index: 2, kind: input, shape index: {}]   ;;  %s1292_s3 = inlined_call_operand.vmem [shape: f32[2,4,8], index: 3, kind: input, shape index: {}]   ;;  %s1293_s4 = inlined_call_operand.vmem [shape: f32[2,4,8,8], index: 4, kind: output, shape index: {}]  }
   0x1 LB: > { %s1053_s16 = sadd.s32 4294967295, %s1175_s15   ;;  %p1057_p0 = scmp.ge.s32.totalorder %s1175_s15, 1  ;;  %s1175_s15 = sphi %s1205_s15, %s14_s15  }
   0x2   : > { %p191_p1 = scmp.lt.s32.totalorder %s1175_s15, 3 }
   0x4   : > { %p192_p2 = pnand %p1057_p0, %p191_p1 }
   0x5   : > { %p231_p3 = scmp.lt.s32.totalorder (!%p192_p2), %s1053_s16, 1 }
   0x6   : > { %195 = sbr.rel (%p192_p2) target bundleno = 728 (0x2d8), region = 36 }
   0xb   : > { %v1177_v0 = vmov 0.0   ;;  %vm1178_vm0 = vmmov 0   ;;  %s1295_s16 = smov (!%p231_p3, %s1053_s16), 1  ;;  %vm317_vm1 = vcmask 64512   ;;  %v1179_v13 = vmov 1966171168  }
   0xc   : > { %1102 = vmatprep.subr.mxu0 %v1177_v0  ;;  %1104 = vmatprep.mubr.msk.f32.mxu0 %vm1178_vm0, %v1177_v0  ;;  %s1222_s17 = sshll.u32 %s1295_s16, 5  ;;  %v282_v14 = vunpack.c.l.s4 %v1179_v13  ;;  %v284_v15 = vlaneseq  ;;  %s1064_s24 = sshll.u32 %s1295_s16, 2 }
   0xd   : > { %1107 = vmatprep.subr.mxu1 %v1177_v0  ;;  %1109 = vmatprep.mubr.msk.f32.mxu1 %vm1178_vm0, %v1177_v0  ;;  %s240_s20 = scalar_lea.vmem %s1290_s1, %s1222_s17  ;;  %s235_s23 = scalar_lea.vmem %s1289_s0, %s1222_s17 }
   0xe   : > { %v263_v1 = vld [vmem:[%s240_s20] sm:$0xff]  ;;  %v264_v3 = vld [vmem:[%s240_s20 + $0x8] sm:$0xff]  ;;  %v257_v6 = vld [vmem:[%s235_s23 + $0x10] sm:$0xff]  ;;  %s249_s27 = scalar_lea.vmem %s1292_s3, %s1064_s24  ;;  %v283_v16 = vunpack.c.0.s8 %v282_v14  ;;  %v285_v17 = vshrl.u32 %v284_v15, 7  ;;  %s245_s30 = scalar_lea.vmem %s1291_s2, %s1222_s17 }
   0xf   : > { %v255_v2 = vld [vmem:[%s235_s23] sm:$0xff]  ;;  %1103 = vmatpush3.xpose.msk.msra.mxu0 %vm317_vm1, %v263_v1  ;;  %1108 = vmatpush3.xpose.msk.msra.mxu1 %vm317_vm1, %v264_v3  ;;  %v256_v5 = vld [vmem:[%s235_s23 + $0x8] sm:$0xff]  ;;  %v265_v7 = vld [vmem:[%s240_s20 + $0x10] sm:$0xff]  ;;  %v261_v11 = vmul.f32 0.70710677, %v257_v6  ;;  %s254_s7 = scalar_lea.vmem %s1293_s4, %s1222_s17 }
  0x10   : > { %v259_v4 = vmul.f32 0.70710677, %v255_v2  ;;  %1112 = vmatprep.subr.mxu0 %v1177_v0  ;;  %v260_v8 = vmul.f32 0.70710677, %v256_v5  ;;  %1117 = vmatprep.subr.mxu1 %v1177_v0  ;;  %v258_v9 = vld [vmem:[%s235_s23 + $0x18] sm:$0xff]  ;;  %v286_v19 = vsub.s32 %v283_v16, %v285_v17  ;;  %v299_v22 = vsub.s32 0, %v285_v17 }
  0x11   : > { %v266_v10 = vld [vmem:[%s240_s20 + $0x18] sm:$0xff]  ;;  %v262_v12 = vmul.f32 0.70710677, %v258_v9  ;;  %v267_v3 = vld [vmem:[%s245_s30] sm:$0xff] }
  0x12   : > { %1105 = vmatmul.mubr.msk.f32.vlgmr.msra.gmra.mxu0 %vm317_vm1, %v259_v4  ;;  %1110 = vmatmul.mubr.msk.f32.vlgmr.msra.gmra.mxu1 %vm317_vm1, %v260_v8  ;;  %v1067_v18 = vld.sshfl [vmem:[%s249_s27] sm:$0x33 pattern:$0x75316420]  ;;  %v268_v4 = vld [vmem:[%s245_s30 + $0x8] sm:$0xff]  ;;  %v270_v15 = vld [vmem:[%s245_s30 + $0x18] sm:$0xff] }
  0x13   : > { %1113 = vmatpush3.xpose.msk.msra.mxu0 %vm317_vm1, %v265_v7  ;;  %1114 = vmatprep.mubr.msk.f32.mxu0 %vm1178_vm0, %v1177_v0  ;;  %v280_v20 = vcombine.high %v1067_v18, %v1067_v18  ;;  %v287_v21 = vrot.slane %v1067_v18, %v286_v19 }
  0x14   : > { %1118 = vmatpush3.xpose.msk.msra.mxu1 %vm317_vm1, %v266_v10  ;;  %1119 = vmatprep.mubr.msk.f32.mxu1 %vm1178_vm0, %v1177_v0 }
  0x15   : > { %1122 = vmatprep.subr.mxu0 %v1177_v0  ;;  %1127 = vmatprep.subr.mxu1 %v1177_v0  ;;  %v294_v23 = vrot.slane %v280_v20, %v286_v19  ;;  %v300_v24 = vrot.slane %v287_v21, %v299_v22  ;;  %v295_v26 = vcombine.high %v287_v21, %v287_v21 }
  0x16   : > { %1115 = vmatmul.mubr.msk.f32.vlgmr.msra.gmra.mxu0 %vm317_vm1, %v261_v11  ;;  %v269_v11 = vld [vmem:[%s245_s30 + $0x10] sm:$0xff] }
  0x17   : > { %1120 = vmatmul.mubr.msk.f32.vlgmr.msra.gmra.mxu1 %vm317_vm1, %v262_v12  ;;  %1124 = vmatprep.mubr.msk.f32.mxu0 %vm1178_vm0, %v1177_v0  ;;  %v304_v25 = vrot.slane %v294_v23, %v299_v22  ;;  %v296_v27 = vcombine.high %v294_v23, %v294_v23  ;;  %v308_v32 = vrot.slane %v295_v26, %v299_v22 }
  0x18   : > { %1129 = vmatprep.mubr.msk.f32.mxu1 %vm1178_vm0, %v1177_v0  ;;  %1123 = vmatpush3.msra.mxu0 %v267_v3 }
  0x19   : > { %v312_v35 = vrot.slane %v296_v27, %v299_v22  ;;  %1132 = vmatprep.subr.mxu0 %v1177_v0  ;;  %1128 = vmatpush3.msra.mxu1 %v268_v4 }
  0x1a   : > { %1137 = vmatprep.subr.mxu1 %v1177_v0 }
  0xd2   : > { %v390_v28 = vpop.f32.mrf.mxu0  ;;  %v466_v29 = vpop.f32.mrf.mxu1 }
  0xd3   : > { %v391_v30 = vadd.f32 %v390_v28, %v300_v24  ;;  %v467_v31 = vadd.f32 %v466_v29, %v304_v25 }
  0xd4   : > { %v1106_v33 = vpop.f32.mrf.mxu0  ;;  %v1111_v34 = vpop.f32.mrf.mxu1 }
  0xd5   : > { %v622_v36 = vsel %vm317_vm1, %v391_v30, -inf  ;;  %v625_v40 = vsel %vm317_vm1, %v467_v31, -inf }
  0xd6   : > { %623 = vmax.xlane.f32.xlu0 %v622_v36  ;;  %v542_v37 = vpop.f32.mrf.mxu0 }
  0xd7   : > { %v543_v38 = vadd.f32 %v542_v37, %v308_v32  ;;  %v618_v39 = vpop.f32.mrf.mxu1 }
  0xd8   : > { %v1116_v41 = vpop.f32.mrf.mxu0  ;;  %v619_v42 = vadd.f32 %v618_v39, %v312_v35 }
  0xd9   : > { %v628_v43 = vsel %vm317_vm1, %v543_v38, -inf  ;;  %v1121_v44 = vpop.f32.mrf.mxu1 }
  0xda   : > { %626 = vmax.xlane.f32.xlu0 %v625_v40  ;;  %629 = vmax.xlane.f32.xlu1 %v628_v43  ;;  %v631_v45 = vsel %vm317_vm1, %v619_v42, -inf }
  0xde   : > { %632 = vmax.xlane.f32.xlu1 %v631_v45 }
 0x15f   : > { %v624_v46 = vpop.xlane.xlu0 %623 }
 0x160   : > { %v634_v47 = vsub.f32 %v391_v30, %v624_v46 }
 0x162   : > { %v638_v48 = vmul.f32 1.442695, %v634_v47 }
 0x163   : > { %v627_v49 = vpop.xlane.xlu0 %626  ;;  %v630_v50 = vpop.xlane.xlu1 %629 }
 0x164   : > { %1153 = vpow2.f32 %v638_v48  ;;  %v635_v51 = vsub.f32 %v467_v31, %v627_v49  ;;  %v636_v52 = vsub.f32 %v543_v38, %v630_v50 }
 0x166   : > { %v640_v53 = vmul.f32 1.442695, %v635_v51  ;;  %v642_v54 = vmul.f32 1.442695, %v636_v52 }
 0x167   : > { %v633_v55 = vpop.xlane.xlu1 %632 }
 0x168   : > { %1155 = vpow2.f32 %v640_v53  ;;  %v637_v56 = vsub.f32 %v619_v42, %v633_v55 }
 0x169   : > { %1157 = vpow2.f32 %v642_v54 }
 0x16a   : > { %v644_v57 = vmul.f32 1.442695, %v637_v56 }
 0x16c   : > { %1159 = vpow2.f32 %v644_v57 }
 0x171   : > { %v1154_v58 = vpop.eup %1153 }
 0x172   : > { %v646_v59 = vsel %vm317_vm1, %v1154_v58, 0.0 }
 0x173   : > { %647 = vadd.xlane.f32.xlu0 %v646_v59 }
 0x175   : > { %v1156_v60 = vpop.eup %1155 }
 0x176   : > { %v1158_v61 = vpop.eup %1157  ;;  %v649_v62 = vsel %vm317_vm1, %v1156_v60, 0.0 }
 0x177   : > { %650 = vadd.xlane.f32.xlu1 %v649_v62  ;;  %v652_v63 = vsel %vm317_vm1, %v1158_v61, 0.0 }
 0x178   : > { %653 = vadd.xlane.f32.xlu0 %v652_v63 }
 0x179   : > { %v1160_v1 = vpop.eup %1159 }
 0x17a   : > { %v655_v2 = vsel %vm317_vm1, %v1160_v1, 0.0 }
 0x17b   : > { %656 = vadd.xlane.f32.xlu1 %v655_v2 }
 0x1fc   : > { %v648_v5 = vpop.xlane.xlu0 %647 }
 0x1fd   : > { %1161 = vrcp.f32 %v648_v5 }
 0x200   : > { %v651_v6 = vpop.xlane.xlu1 %650 }
 0x201   : > { %v654_v7 = vpop.xlane.xlu0 %653  ;;  %1163 = vrcp.f32 %v651_v6 }
 0x202   : > { %1165 = vrcp.f32 %v654_v7 }
 0x204   : > { %v657_v8 = vpop.xlane.xlu1 %656 }
 0x205   : > { %1167 = vrcp.f32 %v657_v8 }
 0x20a   : > { %v1162_v9 = vpop.eup %1161 }
 0x20b   : > { %v659_v10 = vmul.f32 %v1162_v9, %v1154_v58 }
 0x20d   : > { %1125 = vmatmul.mubr.msk.f32.vlgmr.msra.gmra.mxu0 %vm317_vm1, %v659_v10 }
 0x20e   : > { %v1164_v12 = vpop.eup %1163  ;;  %1133 = vmatpush3.msra.mxu0 %v269_v11  ;;  %1134 = vmatprep.mubr.msk.f32.mxu0 %vm1178_vm0, %v1177_v0 }
 0x20f   : > { %v1166_v13 = vpop.eup %1165  ;;  %v661_v14 = vmul.f32 %v1164_v12, %v1156_v60 }
 0x210   : > { %v663_v16 = vmul.f32 %v1166_v13, %v1158_v61 }
 0x211   : > { %1130 = vmatmul.mubr.msk.f32.vlgmr.msra.gmra.mxu1 %vm317_vm1, %v661_v14 }
 0x212   : > { %v1168_v17 = vpop.eup %1167  ;;  %1135 = vmatmul.mubr.msk.f32.vlgmr.msra.gmra.mxu0 %vm317_vm1, %v663_v16  ;;  %1138 = vmatpush3.msra.mxu1 %v270_v15 }
 0x213   : > { %1139 = vmatprep.mubr.msk.f32.mxu1 %vm1178_vm0, %v1177_v0  ;;  %v665_v18 = vmul.f32 %v1168_v17, %v1160_v1 }
 0x215   : > { %1140 = vmatmul.mubr.msk.f32.vlgmr.msra.gmra.mxu1 %vm317_vm1, %v665_v18 }
 0x2cd   : > { %v735_v19 = vpop.f32.mrf.mxu0 }
 0x2ce   : > { %958 = vst.msk [vmem:[%s254_s7] sm:$0xff] %vm317_vm1, %v735_v19 }
 0x2cf   : > { %v1126_v20 = vpop.f32.mrf.mxu0 }
 0x2d1   : > { %v808_v21 = vpop.f32.mrf.mxu1 }
 0x2d2   : > { %959 = vst.msk [vmem:[%s254_s7 + $0x8] sm:$0xff] %vm317_vm1, %v808_v21  ;;  %v881_v22 = vpop.f32.mrf.mxu0 }
 0x2d3   : > { %960 = vst.msk [vmem:[%s254_s7 + $0x10] sm:$0xff] %vm317_vm1, %v881_v22  ;;  %v1131_v23 = vpop.f32.mrf.mxu1 }
 0x2d4   : > { %v1136_v24 = vpop.f32.mrf.mxu0 }
 0x2d5   : > { %v954_v0 = vpop.f32.mrf.mxu1 }
 0x2d6   : > { %961 = vst.msk [vmem:[%s254_s7 + $0x18] sm:$0xff] %vm317_vm1, %v954_v0 }
 0x2d7   : > { %v1141_v25 = vpop.f32.mrf.mxu1 }
 0x2d8 PF: > { %s14_s15 = sadd.s32 1, %s1175_s15  }
 0x2d9   : > { %p11_p4 = scmp.ge.s32.totalorder %s14_s15, 4  }
 0x2db   :  { %13 = sbr.rel (!%p11_p4) target bundleno = 1 (0x1), region = 75 }

// kernel: encoder_new.7
= control target key start
LH: loop header
LB: loop body
LE: loop exit
PB: predicated region body
PF: predicated region fallthrough
CT: control target
= control target key end

     0   :  { %vm84_vm0 = vcmask 261120   ;;  %vm306_vm1 = vcmask 523264   ;;  %s668_s19 = smov 96   ;;  %s669_s20 = smov 64   ;;  %s902_s2 = inlined_call_operand.vmem [shape: f32[32,32], index: 2, kind: input, shape index: {}]   ;;  %s903_s0 = inlined_call_operand.vmem [shape: f32[16,32], index: 0, kind: input, shape index: {}]   ;;  %s904_s3 = inlined_call_operand.vmem [shape: f32[1,32], index: 3, kind: input, shape index: {}]   ;;  %s905_s1 = inlined_call_operand.vmem [shape: f32[16,32], index: 1, kind: input, shape index: {}]   ;;  %s906_s6 = inlined_call_operand.vmem [shape: f32[32,64], index: 6, kind: input, shape index: {}]   ;;  %s907_s8 = inlined_call_operand.vmem [shape: f32[64,32], index: 8, kind: input, shape index: {}]   ;;  %s908_s4 = inlined_call_operand.vmem [shape: f32[1,32], index: 4, kind: input, shape index: {}]   ;;  %s909_s5 = inlined_call_operand.vmem [shape: f32[1,32], index: 5, kind: input, shape index: {}]   ;;  %s910_s7 = inlined_call_operand.vmem [shape: f32[1,64], index: 7, kind: input, shape index: {}]   ;;  %s911_s9 = inlined_call_operand.vmem [shape: f32[1,32], index: 9, kind: input, shape index: {}]   ;;  %s912_s12 = inlined_call_operand.vmem [shape: f32[32,96], index: 12, kind: input, shape index: {}]   ;;  %s913_s10 = inlined_call_operand.vmem [shape: f32[1,32], index: 10, kind: input, shape index: {}]   ;;  %s914_s11 = inlined_call_operand.vmem [shape: f32[1,32], index: 11, kind: input, shape index: {}]   ;;  %s915_s14 = inlined_call_operand.vmem [shape: f32[16,32], index: 14, kind: output, shape index: {0}]   ;;  %s916_s13 = inlined_call_operand.vmem [shape: f32[1,96], index: 13, kind: input, shape index: {}]   ;;  %s917_s15 = inlined_call_operand.vmem [shape: f32[16,32], index: 15, kind: output, shape index: {1}]   ;;  %s918_s16 = inlined_call_operand.vmem [shape: f32[16,32], index: 16, kind: output, shape index: {2}]   ;;  %s919_s17 = inlined_call_operand.vmem [shape: f32[16,32], index: 17, kind: output, shape index: {3}]  }
   0x1   :  { %922 = sst [smem:[#allocation2_spill]] %s902_s2  ;;  %v562_v7 = vld [vmem:[%s904_s3] ss:$0 sm:$0xff]  ;;  %v54_v12 = vld [vmem:[%s905_s1 + $0x8] sm:$0xff]  ;;  %v65_v27 = vld [vmem:[%s906_s6 + $0x18] sm:$0xff] }
   0x2   :  { %923 = sst [smem:[#allocation3_spill]] %s903_s0  ;;  %v53_v9 = vld [vmem:[%s905_s1] sm:$0xff]  ;;  %v64_v28 = vld [vmem:[%s906_s6 + $0x10] sm:$0xff]  ;;  %617 = vmatprep.subr.mxu1 %v65_v27  ;;  %v63_v29 = vld [vmem:[%s906_s6 + $0x8] sm:$0xff] }
   0x3   :  { %s924_s26 = sld [smem:[#allocation2_spill]]  ;;  %618 = vmatpush3.msra.mxu1 %v65_v27  ;;  %v62_v30 = vld [vmem:[%s906_s6] sm:$0xff]  ;;  %v74_v31 = vld [vmem:[%s907_s8 + $0x38] sm:$0xff]  ;;  %v73_v32 = vld [vmem:[%s907_s8 + $0x30] sm:$0xff] }
   0x4   :  { %s925_s30 = sld [smem:[#allocation3_spill]]  ;;  %619 = vmatprep.subr.mxu1 %v64_v28  ;;  %v72_v33 = vld [vmem:[%s907_s8 + $0x28] sm:$0xff]  ;;  %v71_v34 = vld [vmem:[%s907_s8 + $0x20] sm:$0xff]  ;;  %v70_v51 = vld [vmem:[%s907_s8 + $0x18] sm:$0xff] }
   0x5   :  { %620 = vmatpush3.msra.mxu1 %v64_v28  ;;  %v565_v42 = vld [vmem:[%s908_s4] ss:$0 sm:$0xff]  ;;  %v69_v52 = vld [vmem:[%s907_s8 + $0x10] sm:$0xff]  ;;  %v68_v53 = vld [vmem:[%s907_s8 + $0x8] sm:$0xff] }
   0x6   :  { %621 = vmatprep.subr.mxu1 %v63_v29  ;;  %v566_v44 = vld [vmem:[%s909_s5] ss:$0 sm:$0xff] }
   0x7   :  { %622 = vmatpush3.msra.mxu1 %v63_v29  ;;  %v67_v54 = vld [vmem:[%s907_s8] sm:$0xff] }
   0x8   :  { %623 = vmatprep.subr.mxu1 %v62_v30  ;;  %v567_v55 = vld [vmem:[%s910_s7] ss:$0 sm:$0xff] }
   0x9   :  { %v58_v0 = vld [vmem:[%s924_s26 + $0x18] sm:$0xff]  ;;  %v57_v1 = vld [vmem:[%s924_s26 + $0x10] sm:$0xff]  ;;  %v56_v3 = vld [vmem:[%s924_s26 + $0x8] sm:$0xff]  ;;  %624 = vmatpush3.msra.mxu1 %v62_v30 }
   0xa   :  { %606 = vmatprep.subr.mxu0 %v58_v0  ;;  %v51_v2 = vld [vmem:[%s925_s30] sm:$0xff]  ;;  %v52_v5 = vld [vmem:[%s925_s30 + $0x8] sm:$0xff] }
   0xb   :  { %607 = vmatpush3.msra.mxu0 %v58_v0  ;;  %614 = vmatprep.mubr.msk.f32.mxu0 %vm84_vm0, %v51_v2  ;;  %v55_v4 = vld [vmem:[%s924_s26] sm:$0xff] }
   0xc   :  { %608 = vmatprep.subr.mxu0 %v57_v1  ;;  %v570_v62 = vld [vmem:[%s911_s9] ss:$0 sm:$0xff] }
   0xd   :  { %609 = vmatpush3.msra.mxu0 %v57_v1  ;;  %v573_v28 = vld [vmem:[%s913_s10] ss:$0 sm:$0xff] }
   0xe   :  { %610 = vmatprep.subr.mxu0 %v56_v3 }
   0xf   :  { %611 = vmatpush3.msra.mxu0 %v56_v3 }
  0x10   :  { %612 = vmatprep.subr.mxu0 %v55_v4 }
  0x11   :  { %613 = vmatpush3.msra.mxu0 %v55_v4 }
  0x12   :  { %615 = vmatmul.mubr.msk.f32.vlgmr.msra.gmra.mxu0 %vm84_vm0, %v52_v5  ;;  %628 = vmatprep.subr.mxu0 %v74_v31 }
  0x13   :  { %629 = vmatpush3.msra.mxu0 %v74_v31  ;;  %v574_v31 = vld [vmem:[%s914_s11] ss:$0 sm:$0xff] }
  0x14   :  { %630 = vmatprep.subr.mxu0 %v73_v32 }
  0x15   :  { %631 = vmatpush3.msra.mxu0 %v73_v32 }
  0x16   :  { %632 = vmatprep.subr.mxu0 %v72_v33 }
  0x17   :  { %633 = vmatpush3.msra.mxu0 %v72_v33 }
  0x18   :  { %634 = vmatprep.subr.mxu0 %v71_v34 }
  0x19   :  { %635 = vmatpush3.msra.mxu0 %v71_v34 }
  0x1a   :  { %636 = vmatprep.subr.mxu0 %v70_v51 }
  0x1b   :  { %637 = vmatpush3.msra.mxu0 %v70_v51 }
  0x1c   :  { %638 = vmatprep.subr.mxu0 %v69_v52 }
  0x1d   :  { %639 = vmatpush3.msra.mxu0 %v69_v52 }
  0x1e   :  { %640 = vmatprep.subr.mxu0 %v68_v53 }
  0x1f   :  { %641 = vmatpush3.msra.mxu0 %v68_v53 }
  0x20   :  { %642 = vmatprep.subr.mxu0 %v67_v54 }
  0x21   :  { %643 = vmatpush3.msra.mxu0 %v67_v54 }
  0xd2   :  { %v616_v6 = vpop.f32.mrf.mxu0 }
  0xd3   :  { %v163_v10 = vadd.f32 %v616_v6, %v562_v7 }
  0xd4   :  { %v157_v8 = vpop.f32.mrf.mxu0 }
  0xd5   :  { %v158_v11 = vadd.f32 %v562_v7, %v157_v8  ;;  %v167_v15 = vadd.f32 %v163_v10, %v54_v12 }
  0xd7   :  { %v166_v13 = vadd.f32 %v158_v11, %v53_v9  ;;  %v171_v16 = vsel %vm84_vm0, %v167_v15, 0.0 }
  0xd9   :  { %v168_v14 = vsel %vm84_vm0, %v166_v13, 0.0 }
  0xda   :  { %169 = vadd.xlane.f32.xlu0 %v168_v14 }
  0xde   :  { %172 = vadd.xlane.f32.xlu0 %v171_v16 }
 0x163   :  { %v170_v17 = vpop.xlane.xlu0 %169 }
 0x164   :  { %v175_v18 = vmul.f32 0.03125, %v170_v17  ;;  %v437_v17 = vld [vmem:[%s912_s12 + $0x18] sm:$0xff] }
 0x165   :  { %647 = vmatprep.subr.mxu1 %v437_v17 }
 0x166   :  { %v177_v19 = vsub.f32 %v166_v13, %v175_v18  ;;  %v436_v18 = vld [vmem:[%s912_s12 + $0x10] sm:$0xff] }
 0x167   :  { %v173_v20 = vpop.xlane.xlu0 %172 }
 0x168   :  { %v176_v21 = vmul.f32 0.03125, %v173_v20  ;;  %v179_v22 = vmul.f32 %v177_v19, %v177_v19  ;;  %v434_v20 = vld [vmem:[%s912_s12] sm:$0xff] }
 0x16a   :  { %v178_v23 = vsub.f32 %v167_v15, %v176_v21  ;;  %v181_v24 = vsel %vm84_vm0, %v179_v22, 0.0 }
 0x16b   :  { %182 = vadd.xlane.f32.xlu1 %v181_v24 }
 0x16c   :  { %v180_v25 = vmul.f32 %v178_v23, %v178_v23 }
 0x16e   :  { %v184_v26 = vsel %vm84_vm0, %v180_v25, 0.0 }
 0x16f   :  { %185 = vadd.xlane.f32.xlu1 %v184_v26 }
 0x1f4   :  { %v183_v35 = vpop.xlane.xlu1 %182 }
 0x1f5   :  { %v187_v36 = vmul.f32 0.03125, %v183_v35 }
 0x1f7   :  { %v189_v37 = vadd.f32 1e-05, %v187_v36 }
 0x1f8   :  { %v186_v38 = vpop.xlane.xlu1 %185 }
 0x1f9   :  { %660 = vrsqrt.f32 %v189_v37  ;;  %v188_v39 = vmul.f32 0.03125, %v186_v38  ;;  %v575_v37 = vld [vmem:[%s916_s13] ss:$0 sm:$0xff] }
 0x1fb   :  { %v190_v40 = vadd.f32 1e-05, %v188_v39 }
 0x1fd   :  { %662 = vrsqrt.f32 %v190_v40 }
 0x206   :  { %v661_v41 = vpop.eup %660 }
 0x207   :  { %v193_v43 = vmul.f32 %v661_v41, %v177_v19  ;;  %v435_v19 = vld [vmem:[%s912_s12 + $0x8] sm:$0xff] }
 0x209   :  { %v201_v45 = vmul.f32 %v565_v42, %v193_v43 }
 0x20a   :  { %v663_v46 = vpop.eup %662 }
 0x20b   :  { %v194_v47 = vmul.f32 %v663_v46, %v178_v23  ;;  %v209_v48 = vadd.f32 %v566_v44, %v201_v45 }
 0x20d   :  { %v202_v49 = vmul.f32 %v565_v42, %v194_v47  ;;  %625 = vmatprep.mubr.msk.f32.mxu1 %vm84_vm0, %v209_v48 }
 0x20f   :  { %v210_v50 = vadd.f32 %v566_v44, %v202_v49 }
 0x211   :  { %626 = vmatmul.mubr.msk.f32.vlgmr.msra.gmra.mxu1 %vm84_vm0, %v210_v50 }
 0x212   :  { %648 = vmatpush3.msra.mxu1 %v437_v17 }
 0x213   :  { %649 = vmatprep.subr.mxu1 %v436_v18 }
 0x214   :  { %650 = vmatpush3.msra.mxu1 %v436_v18 }
 0x215   :  { %651 = vmatprep.subr.mxu1 %v435_v19 }
 0x216   :  { %652 = vmatpush3.msra.mxu1 %v435_v19 }
 0x217   :  { %653 = vmatprep.subr.mxu1 %v434_v20 }
 0x218   :  { %654 = vmatpush3.msra.mxu1 %v434_v20 }
 0x2d1   :  { %v627_v56 = vpop.f32.mrf.mxu1 }
 0x2d2   :  { %v295_v57 = vadd.f32 %v627_v56, %v567_v55 }
 0x2d3   :  { %v289_v58 = vpop.f32.mrf.mxu1 }
 0x2d4   :  { %v290_v59 = vadd.f32 %v567_v55, %v289_v58  ;;  %v299_v61 = vmax.f32 %v295_v57, 0.0 }
 0x2d6   :  { %v298_v60 = vmax.f32 %v290_v59, 0.0 }
 0x2d8   :  { %644 = vmatprep.mubr.msk.f32.mxu0 %vm306_vm1, %v298_v60 }
 0x2d9   :  { %645 = vmatmul.mubr.msk.f32.vlgmr.msra.gmra.mxu0 %vm306_vm1, %v299_v61 }
 0x399   :  { %v646_v63 = vpop.f32.mrf.mxu0 }
 0x39a   :  { %v385_v0 = vadd.f32 %v646_v63, %v570_v62 }
 0x39b   :  { %v379_v1 = vpop.f32.mrf.mxu0 }
 0x39c   :  { %v380_v2 = vadd.f32 %v570_v62, %v379_v1  ;;  %v389_v3 = vadd.f32 %v385_v0, %v210_v50 }
 0x39e   :  { %v393_v4 = vsel %vm84_vm0, %v389_v3, 0.0  ;;  %v388_v5 = vadd.f32 %v380_v2, %v209_v48 }
 0x39f   :  { %394 = vadd.xlane.f32.xlu1 %v393_v4 }
 0x3a0   :  { %v390_v6 = vsel %vm84_vm0, %v388_v5, 0.0 }
 0x3a1   :  { %391 = vadd.xlane.f32.xlu0 %v390_v6 }
 0x428   :  { %v395_v7 = vpop.xlane.xlu1 %394 }
 0x429   :  { %v397_v8 = vmul.f32 0.03125, %v395_v7 }
 0x42a   :  { %v392_v9 = vpop.xlane.xlu0 %391 }
 0x42b   :  { %v399_v10 = vsub.f32 %v389_v3, %v397_v8  ;;  %v396_v11 = vmul.f32 0.03125, %v392_v9 }
 0x42d   :  { %v398_v12 = vsub.f32 %v388_v5, %v396_v11  ;;  %v401_v13 = vmul.f32 %v399_v10, %v399_v10 }
 0x42f   :  { %v405_v14 = vsel %vm84_vm0, %v401_v13, 0.0  ;;  %v400_v15 = vmul.f32 %v398_v12, %v398_v12 }
 0x430   :  { %406 = vadd.xlane.f32.xlu1 %v405_v14 }
 0x431   :  { %v402_v16 = vsel %vm84_vm0, %v400_v15, 0.0 }
 0x432   :  { %403 = vadd.xlane.f32.xlu0 %v402_v16 }
 0x4b9   :  { %v407_v21 = vpop.xlane.xlu1 %406 }
 0x4ba   :  { %v409_v22 = vmul.f32 0.03125, %v407_v21 }
 0x4bb   :  { %v404_v23 = vpop.xlane.xlu0 %403 }
 0x4bc   :  { %v411_v24 = vadd.f32 1e-05, %v409_v22  ;;  %v408_v25 = vmul.f32 0.03125, %v404_v23 }
 0x4be   :  { %664 = vrsqrt.f32 %v411_v24  ;;  %v410_v26 = vadd.f32 1e-05, %v408_v25 }
 0x4c0   :  { %666 = vrsqrt.f32 %v410_v26 }
 0x4cb   :  { %v665_v27 = vpop.eup %664 }
 0x4cc   :  { %v415_v29 = vmul.f32 %v665_v27, %v399_v10 }
 0x4cd   :  { %v667_v30 = vpop.eup %666 }
 0x4ce   :  { %v414_v32 = vmul.f32 %v667_v30, %v398_v12  ;;  %v423_v33 = vmul.f32 %v573_v28, %v415_v29 }
 0x4d0   :  { %v422_v34 = vmul.f32 %v573_v28, %v414_v32  ;;  %v431_v35 = vadd.f32 %v574_v31, %v423_v33 }
 0x4d2   :  { %v430_v36 = vadd.f32 %v574_v31, %v422_v34  ;;  %433 = vst.msk [vmem:[%s915_s14 + $0x8] sm:$0xff] %vm84_vm0, %v431_v35 }
 0x4d4   :  { %432 = vst.msk [vmem:[%s915_s14] sm:$0xff] %vm84_vm0, %v430_v36  ;;  %655 = vmatprep.mubr.msk.f32.mxu1 %vm84_vm0, %v430_v36 }
 0x4d5   :  { %656 = vmatmul.mubr.msk.f32.vlgmr.msra.gmra.mxu1 %vm84_vm0, %v431_v35 }
 0x595   :  { %v657_v38 = vpop.f32.mrf.mxu1 }
 0x596   :  { %v523_v39 = vadd.f32 %v657_v38, %v575_v37 }
 0x597   :  { %v517_v40 = vpop.f32.mrf.mxu1 }
 0x598   :  { %527 = vst.msk [vmem:[%s917_s15 + $0x8] sm:$0xff] %vm84_vm0, %v523_v39  ;;  %v518_v41 = vadd.f32 %v575_v37, %v517_v40  ;;  %532 = vrot.lane.b32.xlu1 %v523_v39, %s668_s19 }
 0x59a   :  { %526 = vst.msk [vmem:[%s917_s15] sm:$0xff] %vm84_vm0, %v518_v41  ;;  %530 = vrot.lane.b32.xlu0 %v518_v41, %s668_s19 }
 0x59c   :  { %538 = vrot.lane.b32.xlu1 %v518_v41, %s669_s20 }
 0x5a0   :  { %540 = vrot.lane.b32.xlu1 %v523_v39, %s669_s20 }
 0x60a   :  { %v533_v42 = vpop.permute.xlu1 %532 }
 0x60b   :  { %537 = vst.msk [vmem:[%s918_s16 + $0x8] sm:$0xff] %vm84_vm0, %v533_v42 }
 0x60c   :  { %v531_v43 = vpop.permute.xlu0 %530 }
 0x60d   :  { %536 = vst.msk [vmem:[%s918_s16] sm:$0xff] %vm84_vm0, %v531_v43 }
 0x60e   :  { %v539_v44 = vpop.permute.xlu1 %538 }
 0x60f   :  { %544 = vst.msk [vmem:[%s919_s17] sm:$0xff] %vm84_vm0, %v539_v44 }
 0x612   :  { %v541_v45 = vpop.permute.xlu1 %540 }
 0x613   :  { %545 = vst.msk [vmem:[%s919_s17 + $0x8] sm:$0xff] %vm84_vm0, %v541_v45 }

// kernel: encoder_new.9
= control target key start
LH: loop header
LB: loop body
LE: loop exit
PB: predicated region body
PF: predicated region fallthrough
CT: control target
= control target key end

     0   :  { %vm75_vm0 = vcmask 261120   ;;  %s716_s0 = inlined_call_operand.vmem [shape: f32[16,32], index: 0, kind: input, shape index: {}]   ;;  %s717_s1 = inlined_call_operand.vmem [shape: f32[16,32], index: 1, kind: input, shape index: {}]   ;;  %s718_s2 = inlined_call_operand.vmem [shape: f32[32,32], index: 2, kind: input, shape index: {}]   ;;  %s719_s3 = inlined_call_operand.vmem [shape: f32[1,32], index: 3, kind: input, shape index: {}]   ;;  %s720_s4 = inlined_call_operand.vmem [shape: f32[1,32], index: 4, kind: input, shape index: {}]   ;;  %s721_s5 = inlined_call_operand.vmem [shape: f32[1,32], index: 5, kind: input, shape index: {}]   ;;  %s722_s6 = inlined_call_operand.vmem [shape: f32[32,64], index: 6, kind: input, shape index: {}]   ;;  %s723_s7 = inlined_call_operand.vmem [shape: f32[1,64], index: 7, kind: input, shape index: {}]   ;;  %s724_s8 = inlined_call_operand.vmem [shape: f32[64,32], index: 8, kind: input, shape index: {}]   ;;  %s725_s9 = inlined_call_operand.vmem [shape: f32[1,32], index: 9, kind: input, shape index: {}]   ;;  %s726_s10 = inlined_call_operand.vmem [shape: f32[1,32], index: 10, kind: input, shape index: {}]   ;;  %s727_s11 = inlined_call_operand.vmem [shape: f32[1,32], index: 11, kind: input, shape index: {}]   ;;  %s728_s12 = inlined_call_operand.hbm [shape: f32[16,32], index: 12, kind: output, shape index: {}]  }
   0x1   :  { %v49_v0 = vld [vmem:[%s718_s2 + $0x18] sm:$0xff]  ;;  %v48_v1 = vld [vmem:[%s718_s2 + $0x10] sm:$0xff]  ;;  %v42_v2 = vld [vmem:[%s716_s0] sm:$0xff] }
   0x2   :  { %476 = vmatprep.subr.mxu1 %v49_v0  ;;  %v47_v3 = vld [vmem:[%s718_s2 + $0x8] sm:$0xff]  ;;  %484 = vmatprep.mubr.msk.f32.mxu1 %vm75_vm0, %v42_v2 }
   0x3   :  { %477 = vmatpush3.msra.mxu1 %v49_v0 }
   0x4   :  { %17 = vsyncpa [#allocation3], 0  ;;  %478 = vmatprep.subr.mxu1 %v48_v1  ;;  %v46_v4 = vld [vmem:[%s718_s2] sm:$0xff]  ;;  %v43_v5 = vld [vmem:[%s716_s0 + $0x8] sm:$0xff]  ;;  %vm297_vm1 = vcmask 523264   ;;  %s550_s25 = smov [#allocation2]  }
   0x5   :  { %479 = vmatpush3.msra.mxu1 %v48_v1  ;;  %v441_v7 = vld [vmem:[%s719_s3] ss:$0 sm:$0xff]  ;;  %v45_v12 = vld [vmem:[%s717_s1 + $0x8] sm:$0xff]  ;;  %v56_v27 = vld [vmem:[%s722_s6 + $0x18] sm:$0xff]  ;;  %s430_s26 = sshll.u32 %s550_s25, 4  ;;  %s431_s26 = int_to_ptr.vmem [resolvable:$true] %s430_s26 }
   0x6   :  { %480 = vmatprep.subr.mxu1 %v47_v3  ;;  %v44_v9 = vld [vmem:[%s717_s1] sm:$0xff]  ;;  %v55_v28 = vld [vmem:[%s722_s6 + $0x10] sm:$0xff]  ;;  %v54_v29 = vld [vmem:[%s722_s6 + $0x8] sm:$0xff]  ;;  %s528_s27 = scalar_lea.vmem %s431_s26, 256  ;;  %p533_p1 = scmp.lt.s32.totalorder %s431_s26, %s431_s26 }
   0x7   :  { %481 = vmatpush3.msra.mxu1 %v47_v3  ;;  %v53_v30 = vld [vmem:[%s722_s6] sm:$0xff]  ;;  %v65_v31 = vld [vmem:[%s724_s8 + $0x38] sm:$0xff]  ;;  %v64_v32 = vld [vmem:[%s724_s8 + $0x30] sm:$0xff]  ;;  %p529_p0 = scmp.ne.s32.totalorder %s431_s26, %s528_s27  ;;  %p534_p2 = scmp.lt.s32.totalorder %s528_s27, %s528_s27 }
   0x8   :  { %482 = vmatprep.subr.mxu1 %v46_v4  ;;  %498 = vmatprep.subr.mxu0 %v65_v31  ;;  %v63_v33 = vld [vmem:[%s724_s8 + $0x28] sm:$0xff]  ;;  %v62_v34 = vld [vmem:[%s724_s8 + $0x20] sm:$0xff]  ;;  %v61_v51 = vld [vmem:[%s724_s8 + $0x18] sm:$0xff] }
   0x9   :  { %483 = vmatpush3.msra.mxu1 %v46_v4  ;;  %499 = vmatpush3.msra.mxu0 %v65_v31  ;;  %v444_v42 = vld [vmem:[%s720_s4] ss:$0 sm:$0xff]  ;;  %v60_v52 = vld [vmem:[%s724_s8 + $0x10] sm:$0xff]  ;;  %v59_v53 = vld [vmem:[%s724_s8 + $0x8] sm:$0xff]  ;;  %p535_p3 = por %p534_p2, %p533_p1 }
   0xa   :  { %485 = vmatmul.mubr.msk.f32.vlgmr.msra.gmra.mxu1 %vm75_vm0, %v43_v5  ;;  %487 = vmatprep.subr.mxu1 %v56_v27  ;;  %v445_v44 = vld [vmem:[%s721_s5] ss:$0 sm:$0xff] }
   0xb   :  { %488 = vmatpush3.msra.mxu1 %v56_v27  ;;  %500 = vmatprep.subr.mxu0 %v64_v32  ;;  %v58_v54 = vld [vmem:[%s724_s8] sm:$0xff]  ;;  %p536_p4 = pnand %p535_p3, %p529_p0 }
   0xc   :  { %489 = vmatprep.subr.mxu1 %v55_v28  ;;  %501 = vmatpush3.msra.mxu0 %v64_v32  ;;  %v446_v55 = vld [vmem:[%s723_s7] ss:$0 sm:$0xff] }
   0xd   :  { %490 = vmatpush3.msra.mxu1 %v55_v28  ;;  %502 = vmatprep.subr.mxu0 %v63_v33  ;;  %v449_v62 = vld [vmem:[%s725_s9] ss:$0 sm:$0xff] }
   0xe   :  { %491 = vmatprep.subr.mxu1 %v54_v29  ;;  %503 = vmatpush3.msra.mxu0 %v63_v33  ;;  %v453_v27 = vld [vmem:[%s727_s11] ss:$0 sm:$0xff] }
   0xf   :  { %492 = vmatpush3.msra.mxu1 %v54_v29  ;;  %504 = vmatprep.subr.mxu0 %v62_v34 }
  0x10   :  { %493 = vmatprep.subr.mxu1 %v53_v30  ;;  %505 = vmatpush3.msra.mxu0 %v62_v34 }
  0x11   :  { %494 = vmatpush3.msra.mxu1 %v53_v30  ;;  %506 = vmatprep.subr.mxu0 %v61_v51 }
  0x12   :  { %507 = vmatpush3.msra.mxu0 %v61_v51 }
  0x13   :  { %508 = vmatprep.subr.mxu0 %v60_v52 }
  0x14   :  { %509 = vmatpush3.msra.mxu0 %v60_v52 }
  0x15   :  { %510 = vmatprep.subr.mxu0 %v59_v53 }
  0x16   :  { %511 = vmatpush3.msra.mxu0 %v59_v53 }
  0x17   :  { %512 = vmatprep.subr.mxu0 %v58_v54 }
  0x18   :  { %513 = vmatpush3.msra.mxu0 %v58_v54 }
  0xca   :  { %v486_v6 = vpop.f32.mrf.mxu1 }
  0xcb   :  { %v154_v10 = vadd.f32 %v486_v6, %v441_v7 }
  0xcc   :  { %v148_v8 = vpop.f32.mrf.mxu1 }
  0xcd   :  { %v149_v11 = vadd.f32 %v441_v7, %v148_v8  ;;  %v158_v15 = vadd.f32 %v154_v10, %v45_v12 }
  0xcf   :  { %v157_v13 = vadd.f32 %v149_v11, %v44_v9  ;;  %v162_v16 = vsel %vm75_vm0, %v158_v15, 0.0 }
  0xd1   :  { %v159_v14 = vsel %vm75_vm0, %v157_v13, 0.0 }
  0xd2   :  { %160 = vadd.xlane.f32.xlu0 %v159_v14 }
  0xd6   :  { %163 = vadd.xlane.f32.xlu0 %v162_v16 }
 0x15b   :  { %v161_v17 = vpop.xlane.xlu0 %160 }
 0x15c   :  { %v166_v18 = vmul.f32 0.03125, %v161_v17 }
 0x15e   :  { %v168_v19 = vsub.f32 %v157_v13, %v166_v18 }
 0x15f   :  { %v164_v20 = vpop.xlane.xlu0 %163 }
 0x160   :  { %v167_v21 = vmul.f32 0.03125, %v164_v20  ;;  %v170_v22 = vmul.f32 %v168_v19, %v168_v19 }
 0x162   :  { %v169_v23 = vsub.f32 %v158_v15, %v167_v21  ;;  %v172_v24 = vsel %vm75_vm0, %v170_v22, 0.0 }
 0x163   :  { %173 = vadd.xlane.f32.xlu1 %v172_v24  ;;  %v452_v24 = vld [vmem:[%s726_s10] ss:$0 sm:$0xff] }
 0x164   :  { %v171_v25 = vmul.f32 %v169_v23, %v169_v23 }
 0x166   :  { %v175_v26 = vsel %vm75_vm0, %v171_v25, 0.0 }
 0x167   :  { %176 = vadd.xlane.f32.xlu1 %v175_v26 }
 0x1ec   :  { %v174_v35 = vpop.xlane.xlu1 %173 }
 0x1ed   :  { %v178_v36 = vmul.f32 0.03125, %v174_v35 }
 0x1ef   :  { %v180_v37 = vadd.f32 1e-05, %v178_v36 }
 0x1f0   :  { %v177_v38 = vpop.xlane.xlu1 %176 }
 0x1f1   :  { %520 = vrsqrt.f32 %v180_v37  ;;  %v179_v39 = vmul.f32 0.03125, %v177_v38 }
 0x1f3   :  { %v181_v40 = vadd.f32 1e-05, %v179_v39 }
 0x1f5   :  { %522 = vrsqrt.f32 %v181_v40 }
 0x1fe   :  { %v521_v41 = vpop.eup %520 }
 0x1ff   :  { %v184_v43 = vmul.f32 %v521_v41, %v168_v19 }
 0x201   :  { %v192_v45 = vmul.f32 %v444_v42, %v184_v43 }
 0x202   :  { %v523_v46 = vpop.eup %522 }
 0x203   :  { %v185_v47 = vmul.f32 %v523_v46, %v169_v23  ;;  %v200_v48 = vadd.f32 %v445_v44, %v192_v45 }
 0x205   :  { %v193_v49 = vmul.f32 %v444_v42, %v185_v47  ;;  %495 = vmatprep.mubr.msk.f32.mxu1 %vm75_vm0, %v200_v48 }
 0x207   :  { %v201_v50 = vadd.f32 %v445_v44, %v193_v49 }
 0x209   :  { %496 = vmatmul.mubr.msk.f32.vlgmr.msra.gmra.mxu1 %vm75_vm0, %v201_v50 }
 0x2c9   :  { %v497_v56 = vpop.f32.mrf.mxu1 }
 0x2ca   :  { %v286_v57 = vadd.f32 %v497_v56, %v446_v55 }
 0x2cb   :  { %v280_v58 = vpop.f32.mrf.mxu1 }
 0x2cc   :  { %v281_v59 = vadd.f32 %v446_v55, %v280_v58  ;;  %v290_v61 = vmax.f32 %v286_v57, 0.0 }
 0x2ce   :  { %v289_v60 = vmax.f32 %v281_v59, 0.0 }
 0x2d0   :  { %514 = vmatprep.mubr.msk.f32.mxu0 %vm297_vm1, %v289_v60 }
 0x2d1   :  { %515 = vmatmul.mubr.msk.f32.vlgmr.msra.gmra.mxu0 %vm297_vm1, %v290_v61 }
 0x391   :  { %v516_v63 = vpop.f32.mrf.mxu0 }
 0x392   :  { %v376_v0 = vadd.f32 %v516_v63, %v449_v62 }
 0x393   :  { %v370_v1 = vpop.f32.mrf.mxu0 }
 0x394   :  { %v371_v2 = vadd.f32 %v449_v62, %v370_v1  ;;  %v380_v3 = vadd.f32 %v376_v0, %v201_v50 }
 0x396   :  { %v384_v4 = vsel %vm75_vm0, %v380_v3, 0.0  ;;  %v379_v5 = vadd.f32 %v371_v2, %v200_v48 }
 0x397   :  { %385 = vadd.xlane.f32.xlu1 %v384_v4 }
 0x398   :  { %v381_v6 = vsel %vm75_vm0, %v379_v5, 0.0 }
 0x399   :  { %382 = vadd.xlane.f32.xlu0 %v381_v6 }
 0x420   :  { %v386_v7 = vpop.xlane.xlu1 %385 }
 0x421   :  { %v388_v8 = vmul.f32 0.03125, %v386_v7 }
 0x422   :  { %v383_v9 = vpop.xlane.xlu0 %382 }
 0x423   :  { %v390_v10 = vsub.f32 %v380_v3, %v388_v8  ;;  %v387_v11 = vmul.f32 0.03125, %v383_v9 }
 0x425   :  { %v389_v12 = vsub.f32 %v379_v5, %v387_v11  ;;  %v392_v13 = vmul.f32 %v390_v10, %v390_v10 }
 0x427   :  { %v396_v14 = vsel %vm75_vm0, %v392_v13, 0.0  ;;  %v391_v15 = vmul.f32 %v389_v12, %v389_v12 }
 0x428   :  { %397 = vadd.xlane.f32.xlu1 %v396_v14 }
 0x429   :  { %v393_v16 = vsel %vm75_vm0, %v391_v15, 0.0 }
 0x42a   :  { %394 = vadd.xlane.f32.xlu0 %v393_v16 }
 0x4b1   :  { %v398_v17 = vpop.xlane.xlu1 %397 }
 0x4b2   :  { %v400_v18 = vmul.f32 0.03125, %v398_v17 }
 0x4b3   :  { %v395_v19 = vpop.xlane.xlu0 %394 }
 0x4b4   :  { %v402_v20 = vadd.f32 1e-05, %v400_v18  ;;  %v399_v21 = vmul.f32 0.03125, %v395_v19 }
 0x4b6   :  { %524 = vrsqrt.f32 %v402_v20  ;;  %v401_v22 = vadd.f32 1e-05, %v399_v21 }
 0x4b8   :  { %526 = vrsqrt.f32 %v401_v22 }
 0x4c3   :  { %v525_v23 = vpop.eup %524 }
 0x4c4   :  { %v406_v25 = vmul.f32 %v525_v23, %v390_v10 }
 0x4c5   :  { %v527_v26 = vpop.eup %526 }
 0x4c6   :  { %v405_v28 = vmul.f32 %v527_v26, %v389_v12  ;;  %v414_v29 = vmul.f32 %v452_v24, %v406_v25 }
 0x4c8   :  { %v413_v30 = vmul.f32 %v452_v24, %v405_v28  ;;  %v422_v31 = vadd.f32 %v453_v27, %v414_v29 }
 0x4ca   :  { %v421_v32 = vadd.f32 %v453_v27, %v413_v30  ;;  %424 = vst.msk [vmem:[#allocation2 + $0x8] sm:$0xff] %vm75_vm0, %v422_v31 }
 0x4cc   :  { %423 = vst.msk [vmem:[#allocation2] sm:$0xff] %vm75_vm0, %v421_v32 }
 0x4cd   :  { %539 = shalt.err (!%p536_p4)
}
 0x4ce   :  { %s551_s10 = smov 128   ;;  %s552_s11 = smov 8  }
 0x4cf   :  { %436 = dma.vmem_to_hbm [thread:$0]  %s431_s26, 256, %s728_s12, [#allocation3], %s551_s10, %s551_s10, %s552_s11  }
 0x4d0   :  { %548 = dma.done.wait [#allocation3], 256  }
 0x4d1   :  { %549 = vsyncadd [#allocation3], 4294967040 }
 0x4d2   :  { %440 = vsyncpa [#allocation3], 1 }

</bundles_post_ra>
